<compile_context>
chip_gen: v7x
topology: tpu7x:2x2x1
jax: 0.10.0
libtpu: 0.0.40
codegen_flags: <defaults>
</compile_context>

<pallas_src>
import functools
import math

import jax
import jax.numpy as jnp
from jax.experimental import pallas as pl
from jax.experimental.pallas import tpu as pltpu


def _round_up(x, m):
  return ((x + m - 1) // m) * m


def _fused_transformer_kernel(z_ref, gamma_ref, wqkv_ref, wo_ref, w1_ref,
                              w2_ref, o_ref, *, num_heads, block_b, seq_len,
                              d_model, dh_pad):
  """One (batch block, layer) grid step of the fused transformer stack.

  z_ref:     [block_b, S, Dp] f32   padded input embeddings (read at layer 0)
  gamma_ref: [1, 1, Dp]       f32   LayerNorm weight (zero in padded lanes)
  wqkv_ref:  [1, Dp, 3*Dq]    bf16  [Wq^T|Wk^T|Wv^T], head-blocked columns,
                                    1/sqrt(Dh) folded into the Q columns
  wo_ref:    [1, Dq, Dp]      bf16  out_proj^T, head-blocked rows
  w1_ref:    [1, Dp, 2*Hp]    bf16  [W1_x^T | W1_gate^T] (SwiGLU halves)
  w2_ref:    [1, Hp, Dp]      bf16  W2^T
  o_ref:     [block_b, S, Dp] f32   resident carry across the layer axis;
                                    flushed to HBM once per batch block
  """
  layer = pl.program_id(1)

  @pl.when(layer == 0)
  def _():
    o_ref[...] = z_ref[...]

  d_pad = o_ref.shape[-1]
  d_qkv = num_heads * dh_pad
  hid_pad = w2_ref.shape[1]
  rows = block_b * seq_len

  x = o_ref[...].reshape(rows, d_pad)                   # f32 carry
  x_bf = x.astype(jnp.bfloat16)

  # ---- LayerNorm(z): stats over the d_model real lanes (padding is zero) ----
  lane = jax.lax.broadcasted_iota(jnp.int32, (1, d_pad), 1)
  mask = (lane < d_model).astype(jnp.float32)
  inv_d = 1.0 / d_model
  mean = jnp.sum(x, axis=-1, keepdims=True) * inv_d
  xc = (x - mean) * mask
  var = jnp.sum(xc * xc, axis=-1, keepdims=True) * inv_d
  ln_bf = (xc * jax.lax.rsqrt(var + 1e-5) * gamma_ref[0]).astype(jnp.bfloat16)

  # ---- Multi-head self-attention on the *un-normalized* z ----
  qkv = jnp.dot(x_bf, wqkv_ref[0],
                preferred_element_type=jnp.float32)     # [rows, 3*Dq] f32
  qkv_bf = qkv.astype(jnp.bfloat16)

  def to_heads(base):  # [rows, Dq] slab -> [H*Bb, S, dh_pad] head batch
    parts = [
        qkv_bf[:, base + h * dh_pad:base + (h + 1) * dh_pad].reshape(
            block_b, seq_len, dh_pad) for h in range(num_heads)
    ]
    return jnp.concatenate(parts, axis=0) if num_heads > 1 else parts[0]

  qh = to_heads(0)
  kh = to_heads(d_qkv)
  vh = to_heads(2 * d_qkv)

  # All heads in one batched einsum (batch dim = H * block_b).
  s = jnp.einsum('bqd,bkd->bqk', qh, kh,
                 preferred_element_type=jnp.float32)    # [H*Bb, S, S] f32
  s = s - jnp.max(s, axis=-1, keepdims=True)
  p = jnp.exp(s)
  p = p * pl.reciprocal(jnp.sum(p, axis=-1, keepdims=True), approx=True)
  oh = jnp.einsum('bqk,bkd->bqd', p.astype(jnp.bfloat16), vh,
                  preferred_element_type=jnp.float32)   # [H*Bb, S, dh_pad]
  oh_bf = oh.astype(jnp.bfloat16)

  # Re-pack heads along lanes -> [rows, Dq], then ONE full output projection.
  head_cols = [
      oh_bf[h * block_b:(h + 1) * block_b].reshape(rows, dh_pad)
      for h in range(num_heads)
  ]
  attn_in = (jnp.concatenate(head_cols, axis=-1)
             if num_heads > 1 else head_cols[0])        # [rows, Dq]
  attn = jnp.dot(attn_in, wo_ref[0],
                 preferred_element_type=jnp.float32)    # [rows, Dp]
  # TODO(synk): attention dropout omitted (inference / eval semantics).

  # ---- MLP on LayerNorm(z): Linear(D->4D) -> SwiGLU -> Linear(2D->D) ----
  h12 = jnp.dot(ln_bf, w1_ref[0],
                preferred_element_type=jnp.float32)     # [rows, 2*Hp]
  x_part = h12[:, :hid_pad]
  gate = h12[:, hid_pad:]
  swiglu = (gate * jax.nn.sigmoid(gate) * x_part).astype(jnp.bfloat16)
  mlp = jnp.dot(swiglu, w2_ref[0],
                preferred_element_type=jnp.float32)     # [rows, Dp]
  # TODO(synk): MLP dropout omitted (inference / eval semantics).

  o_ref[...] = (x + attn + mlp).reshape(block_b, seq_len, d_pad)


def _prepare_weights(layer_params, z_dim, num_heads, d_pad, dh_pad, hid_pad):
  """Host-side: transpose, fold 1/sqrt(Dh), pad to lane-dense shapes,
  head-block Q/K/V columns and Wo rows, merge QKV / SwiGLU halves, stack over
  layers, cast MXU operands to bf16."""
  dh = z_dim // num_heads
  scale = 1.0 / math.sqrt(dh)
  hid = 2 * z_dim
  d_qkv = num_heads * dh_pad

  def head_cols(w_t):  # [D_in, H*dh] -> [d_pad, H*dh_pad]
    w = w_t.reshape(z_dim, num_heads, dh)
    w = jnp.pad(w, ((0, d_pad - z_dim), (0, 0), (0, dh_pad - dh)))
    return w.reshape(d_pad, d_qkv)

  def head_rows(w_t):  # [H*dh, D_out] -> [H*dh_pad, d_pad]
    w = w_t.reshape(num_heads, dh, z_dim)
    w = jnp.pad(w, ((0, 0), (0, dh_pad - dh), (0, d_pad - z_dim)))
    return w.reshape(d_qkv, d_pad)

  gammas, wqkv_l, wo_l, w1_l, w2_l = [], [], [], [], []
  for p in layer_params:
    gamma = p["gamma"].astype(jnp.float32).reshape(1, z_dim)
    gammas.append(jnp.pad(gamma, ((0, 0), (0, d_pad - z_dim))))

    w_in = p["in_proj"].astype(jnp.float32)              # [3D, D]
    wq = head_cols((w_in[:z_dim] * scale).T)             # scale folded into Q
    wk = head_cols(w_in[z_dim:2 * z_dim].T)
    wv = head_cols(w_in[2 * z_dim:].T)
    wqkv_l.append(jnp.concatenate([wq, wk, wv], axis=-1))  # [d_pad, 3*Dq]

    wo_l.append(head_rows(p["out_proj"].astype(jnp.float32).T))  # [Dq, d_pad]

    w1_t = p["w1"].astype(jnp.float32).T                 # [D, 4D] = [x | gate]
    w1x = jnp.pad(w1_t[:, :hid], ((0, d_pad - z_dim), (0, hid_pad - hid)))
    w1g = jnp.pad(w1_t[:, hid:], ((0, d_pad - z_dim), (0, hid_pad - hid)))
    w1_l.append(jnp.concatenate([w1x, w1g], axis=-1))    # [d_pad, 2*Hp]

    w2_t = p["w2"].astype(jnp.float32).T                 # [2D, D]
    w2_l.append(jnp.pad(w2_t, ((0, hid_pad - hid), (0, d_pad - z_dim))))

  bf = jnp.bfloat16
  return (jnp.stack(gammas),                             # [L, 1, d_pad]  f32
          jnp.stack(wqkv_l).astype(bf),                  # [L, d_pad, 3*Dq]
          jnp.stack(wo_l).astype(bf),                    # [L, Dq, d_pad]
          jnp.stack(w1_l).astype(bf),                    # [L, d_pad, 2*Hp]
          jnp.stack(w2_l).astype(bf))                    # [L, Hp, d_pad]


def _vmem_budget_bytes():
  """~75% of per-core VMEM capacity (128 MiB v5e/v6e, 64 MiB v7x)."""
  cap = 64 * 1024 * 1024      # conservative default = v7x physical VMEM
  try:
    info_fn = getattr(pltpu, "get_tpu_info", None)
    if info_fn is not None:
      cap = int(info_fn().vmem_capacity_bytes)
  except Exception:           # noqa: BLE001 - fall back to conservative cap
    pass
  return (3 * cap) // 4


def _pick_block_b(batch, seq_len, block_bytes_fn, budget):
  """Largest divisor of `batch` whose VMEM footprint fits `budget`; prefer
  >=2 batch blocks (v7x megacore) when the row tile stays >= 512 rows."""
  divisors = [d for d in range(batch, 0, -1) if batch % d == 0]
  best = 1
  for bb in divisors:         # largest first
    if block_bytes_fn(bb) <= budget:
      best = bb
      break
  if batch // best < 2:
    for bb in divisors:
      if bb < best and bb * seq_len >= 512 and block_bytes_fn(bb) <= budget:
        best = bb
        break
  return best


def transformer(z_emb, layer_params, num_heads, block_b=None):
  """Full transformer stack as ONE fused Pallas kernel."""
  batch, seq_len, z_dim = z_emb.shape
  num_layers = len(layer_params)
  assert z_dim % num_heads == 0
  dh = z_dim // num_heads

  # Lane-dense padded sizes: model dim to a multiple of 128, per-head dim to a
  # multiple of 8 sublanes such that H * dh_pad is a multiple of 128.
  d_pad = _round_up(z_dim, 128)
  dh_pad = _round_up(dh, 8)
  while (num_heads * dh_pad) % 128:
    dh_pad += 8
  d_qkv = num_heads * dh_pad
  hid_pad = _round_up(2 * z_dim, 128)

  weights = _prepare_weights(layer_params, z_dim, num_heads, d_pad, dh_pad,
                             hid_pad)
  # TODO(synk): for D >= ~1024 on v7x (64 MiB VMEM), split W1/W2 along the FFN
  # axis with an extra grid dim so per-layer weights need not be fully resident.
  per_layer_w_bytes = sum(
      int(w.size) * w.dtype.itemsize for w in weights) // num_layers

  budget = _vmem_budget_bytes()

  def block_bytes(bb):
    rows = bb * seq_len
    act_io = 4 * rows * d_pad * 4                       # z-in (x2) + out (x2)
    inter = rows * (24 * d_pad + 32 * d_qkv + 18 * hid_pad)  # live temps
    scores = rows * num_heads * seq_len * 14            # s/p/exp buffers
    return 2 * per_layer_w_bytes + act_io + inter + scores + (1 << 20)

  if block_b is None:
    block_b = _pick_block_b(batch, seq_len, block_bytes, budget)
  assert batch % block_b == 0
  num_blocks = batch // block_b

  # Always set the scoped VMEM limit (v5e default is only 16 MiB) but never
  # above ~75% of the physical capacity (keeps v7x' 64 MiB with headroom).
  vmem_limit = int(min(budget, max(block_bytes(block_b) * 5 // 4, 32 << 20)))

  z_in = z_emb.astype(jnp.float32)
  if d_pad != z_dim:
    z_in = jnp.pad(z_in, ((0, 0), (0, 0), (0, d_pad - z_dim)))

  kern = functools.partial(_fused_transformer_kernel, num_heads=num_heads,
                           block_b=block_b, seq_len=seq_len, d_model=z_dim,
                           dh_pad=dh_pad)

  batch_map = lambda b, l: (b, 0, 0)
  layer_map = lambda b, l: (l, 0, 0)

  out_pad = pl.pallas_call(
      kern,
      out_shape=jax.ShapeDtypeStruct((batch, seq_len, d_pad), jnp.float32),
      grid_spec=pltpu.PrefetchScalarGridSpec(
          num_scalar_prefetch=0,
          grid=(num_blocks, num_layers),
          in_specs=[
              pl.BlockSpec((block_b, seq_len, d_pad), batch_map),   # z (padded)
              pl.BlockSpec((1, 1, d_pad), layer_map),               # LN gamma
              pl.BlockSpec((1, d_pad, 3 * d_qkv), layer_map),       # [Wq|Wk|Wv]^T
              pl.BlockSpec((1, d_qkv, d_pad), layer_map),           # Wo^T
              pl.BlockSpec((1, d_pad, 2 * hid_pad), layer_map),     # [W1x|W1g]^T
              pl.BlockSpec((1, hid_pad, d_pad), layer_map),         # W2^T
          ],
          out_specs=pl.BlockSpec((block_b, seq_len, d_pad), batch_map),
      ),
      compiler_params=pltpu.CompilerParams(
          dimension_semantics=("parallel", "arbitrary"),
          vmem_limit_bytes=vmem_limit),
  )(z_in, *weights)

  out = out_pad[..., :z_dim] if d_pad != z_dim else out_pad
  return out.astype(z_emb.dtype)


# ---------------- pure-JAX f32 reference (validation only) ----------------
def _layer_ref(z, p, num_heads):
  batch, seq_len, z_dim = z.shape
  dh = z_dim // num_heads
  mean = z.mean(-1, keepdims=True)
  var = ((z - mean) ** 2).mean(-1, keepdims=True)
  ln = (z - mean) / jnp.sqrt(var + 1e-5) * p["gamma"]
  w = p["in_proj"]
  q = z @ w[:z_dim].T
  k = z @ w[z_dim:2 * z_dim].T
  v = z @ w[2 * z_dim:].T
  qh = q.reshape(batch, seq_len, num_heads, dh).transpose(0, 2, 1, 3)
  kh = k.reshape(batch, seq_len, num_heads, dh).transpose(0, 2, 1, 3)
  vh = v.reshape(batch, seq_len, num_heads, dh).transpose(0, 2, 1, 3)
  s = jnp.einsum("bhqd,bhkd->bhqk", qh, kh) / math.sqrt(dh)
  pm = jax.nn.softmax(s, axis=-1)
  o = jnp.einsum("bhqk,bhkd->bhqd", pm, vh).transpose(0, 2, 1, 3)
  attn = o.reshape(batch, seq_len, z_dim) @ p["out_proj"].T
  h1 = ln @ p["w1"].T
  x_part, gate = h1[..., :2 * z_dim], h1[..., 2 * z_dim:]
  mlp = (jax.nn.silu(gate) * x_part) @ p["w2"].T
  return z + attn + mlp


def make_layer_params(key, z_dim):
  ks = jax.random.split(key, 5)
  s = 0.05
  return dict(
      gamma=(jnp.ones((z_dim,), jnp.float32)
             + 0.1 * jax.random.normal(ks[0], (z_dim,), jnp.float32)),
      in_proj=s * jax.random.normal(ks[1], (3 * z_dim, z_dim), jnp.float32),
      out_proj=s * jax.random.normal(ks[2], (z_dim, z_dim), jnp.float32),
      w1=s * jax.random.normal(ks[3], (4 * z_dim, z_dim), jnp.float32),
      w2=s * jax.random.normal(ks[4], (z_dim, 2 * z_dim), jnp.float32),
  )


if __name__ == "__main__":
  batch, seq_len, z_dim = 2, 8, 32
  num_heads = 4
  num_layers = 2

  root = jax.random.PRNGKey(0)
  kz, *kls = jax.random.split(root, 1 + num_layers)
  z_emb = jax.random.normal(kz, (batch, seq_len, z_dim), jnp.float32)
  layer_params = [make_layer_params(k, z_dim) for k in kls]

  out = transformer(z_emb, layer_params, num_heads)
  out = jax.block_until_ready(out)

  ref = z_emb
  for p in layer_params:
    ref = _layer_ref(ref, p, num_heads)

  assert out.shape == ref.shape
  # Kernel uses bf16 MXU operands with f32 accumulation and an approx softmax
  # reciprocal; compare loosely against the pure-f32 reference.
  assert jnp.allclose(out, ref, rtol=5e-2, atol=5e-2), float(
      jnp.max(jnp.abs(out - ref)))
  print("KERNEL_OK")
</pallas_src>

<mosaic_0001>
module attributes {stable_mosaic.version = 11 : i64} {
  func.func @_fused_transformer_kernel(%arg0: i32, %arg1: i32, %arg2: memref<2x8x128xf32, #tpu.memory_space<vmem>>, %arg3: memref<1x1x128xf32, #tpu.memory_space<vmem>>, %arg4: memref<1x128x384xbf16, #tpu.memory_space<vmem>>, %arg5: memref<1x128x128xbf16, #tpu.memory_space<vmem>>, %arg6: memref<1x128x256xbf16, #tpu.memory_space<vmem>>, %arg7: memref<1x128x128xbf16, #tpu.memory_space<vmem>>, %arg8: memref<2x8x128xf32, #tpu.memory_space<vmem>>) attributes {dimension_semantics = [#tpu.dimension_semantics<parallel>, #tpu.dimension_semantics<arbitrary>], iteration_bounds = array<i64: 1, 2>, scalar_prefetch = 0 : i64, scratch_operands = 0 : i64, tpu.core_type = #tpu.core_type<tc>, window_params = [{transform_indices = @transform_0, window_bounds = array<i64: 2, 8, 128>}, {transform_indices = @transform_1, window_bounds = array<i64: 1, 1, 128>}, {transform_indices = @transform_2, window_bounds = array<i64: 1, 128, 384>}, {transform_indices = @transform_3, window_bounds = array<i64: 1, 128, 128>}, {transform_indices = @transform_4, window_bounds = array<i64: 1, 128, 256>}, {transform_indices = @transform_5, window_bounds = array<i64: 1, 128, 128>}, {transform_indices = @transform_6, window_bounds = array<i64: 2, 8, 128>}]} {
    %c0_i32 = arith.constant 0 : i32
    %0 = arith.cmpi eq, %arg1, %c0_i32 : i32
    %1 = arith.extui %0 : i1 to i32
    %c0_i32_0 = arith.constant 0 : i32
    %2 = arith.cmpi ne, %1, %c0_i32_0 : i32
    scf.if %2 {
      %c0_34 = arith.constant 0 : index
      %c0_35 = arith.constant 0 : index
      %c0_36 = arith.constant 0 : index
      %111 = vector.load %arg2[%c0_34, %c0_35, %c0_36] : memref<2x8x128xf32, #tpu.memory_space<vmem>>, vector<2x8x128xf32>
      %c0_37 = arith.constant 0 : index
      %c0_38 = arith.constant 0 : index
      %c0_39 = arith.constant 0 : index
      %112 = vector.load %arg8[%c0_37, %c0_38, %c0_39] : memref<2x8x128xf32, #tpu.memory_space<vmem>>, vector<2x8x128xf32>
      tpu.vector_store %arg8[%c0_37, %c0_38, %c0_39], %111 {strides = array<i32>} : memref<2x8x128xf32, #tpu.memory_space<vmem>>, vector<2x8x128xf32>,
    } else {
    }
    %c0 = arith.constant 0 : index
    %c0_1 = arith.constant 0 : index
    %c0_2 = arith.constant 0 : index
    %3 = vector.load %arg8[%c0, %c0_1, %c0_2] : memref<2x8x128xf32, #tpu.memory_space<vmem>>, vector<2x8x128xf32>
    %4 = vector.shape_cast %3 : vector<2x8x128xf32> to vector<16x128xf32>
    %5 = arith.truncf %4 : vector<16x128xf32> to vector<16x128xbf16>
    %6 = tpu.iota {dimensions = array<i32: 1>} : vector<1x128xi32>
    %c32_i32 = arith.constant 32 : i32
    %7 = vector.broadcast %c32_i32 : i32 to vector<1x128xi32>
    %8 = arith.cmpi slt, %6, %7 : vector<1x128xi32>
    %9 = arith.extui %8 : vector<1x128xi1> to vector<1x128xi32>
    %10 = arith.sitofp %9 : vector<1x128xi32> to vector<1x128xf32>
    %cst = arith.constant dense<0.000000e+00> : vector<16xf32>
    %11 = vector.multi_reduction <add>, %4, %cst [1] : vector<16x128xf32> to vector<16xf32>
    %12 = vector.shape_cast %11 : vector<16xf32> to vector<16x1xf32>
    %cst_3 = arith.constant 3.125000e-02 : f32
    %13 = vector.broadcast %cst_3 : f32 to vector<16x1xf32>
    %14 = arith.mulf %12, %13 : vector<16x1xf32>
    %15 = vector.broadcast %14 : vector<16x1xf32> to vector<16x128xf32>
    %16 = arith.subf %4, %15 : vector<16x128xf32>
    %17 = vector.broadcast %10 : vector<1x128xf32> to vector<16x128xf32>
    %18 = arith.mulf %16, %17 : vector<16x128xf32>
    %19 = arith.mulf %18, %18 : vector<16x128xf32>
    %cst_4 = arith.constant dense<0.000000e+00> : vector<16xf32>
    %20 = vector.multi_reduction <add>, %19, %cst_4 [1] : vector<16x128xf32> to vector<16xf32>
    %21 = vector.shape_cast %20 : vector<16xf32> to vector<16x1xf32>
    %cst_5 = arith.constant 3.125000e-02 : f32
    %22 = vector.broadcast %cst_5 : f32 to vector<16x1xf32>
    %23 = arith.mulf %21, %22 : vector<16x1xf32>
    %cst_6 = arith.constant 9.99999974E-6 : f32
    %24 = vector.broadcast %cst_6 : f32 to vector<16x1xf32>
    %25 = arith.addf %23, %24 : vector<16x1xf32>
    %26 = math.rsqrt %25 : vector<16x1xf32>
    %27 = vector.broadcast %26 : vector<16x1xf32> to vector<16x128xf32>
    %28 = arith.mulf %18, %27 : vector<16x128xf32>
    %c0_7 = arith.constant 0 : index
    %c0_8 = arith.constant 0 : index
    %c0_9 = arith.constant 0 : index
    %29 = vector.load %arg3[%c0_7, %c0_8, %c0_9] : memref<1x1x128xf32, #tpu.memory_space<vmem>>, vector<1x1x128xf32>
    %30 = vector.shape_cast %29 : vector<1x1x128xf32> to vector<1x128xf32>
    %31 = vector.broadcast %30 : vector<1x128xf32> to vector<16x128xf32>
    %32 = arith.mulf %28, %31 : vector<16x128xf32>
    %33 = arith.truncf %32 : vector<16x128xf32> to vector<16x128xbf16>
    %c0_10 = arith.constant 0 : index
    %c0_11 = arith.constant 0 : index
    %c0_12 = arith.constant 0 : index
    %34 = vector.load %arg4[%c0_10, %c0_11, %c0_12] : memref<1x128x384xbf16, #tpu.memory_space<vmem>>, vector<1x128x384xbf16>
    %35 = vector.shape_cast %34 : vector<1x128x384xbf16> to vector<128x384xbf16>
    %cst_13 = arith.constant dense<0.000000e+00> : vector<16x384xf32>
    %36 = tpu.matmul %5, %35, %cst_13 {dimension_numbers = #tpu.dot_dimension_numbers<[1], [0], [0], [1], [0, 0, 1, 1], [], []>} : vector<16x128xbf16>, vector<128x384xbf16>, vector<16x384xf32> -> vector<16x384xf32>
    %37 = arith.truncf %36 : vector<16x384xf32> to vector<16x384xbf16>
    %38 = vector.extract_strided_slice %37 {offsets = [0, 0], sizes = [16, 32], strides = [1, 1]} : vector<16x384xbf16> to vector<16x32xbf16>
    %39 = vector.shape_cast %38 : vector<16x32xbf16> to vector<2x8x32xbf16>
    %40 = vector.extract_strided_slice %37 {offsets = [0, 32], sizes = [16, 32], strides = [1, 1]} : vector<16x384xbf16> to vector<16x32xbf16>
    %41 = vector.shape_cast %40 : vector<16x32xbf16> to vector<2x8x32xbf16>
    %42 = vector.extract_strided_slice %37 {offsets = [0, 64], sizes = [16, 32], strides = [1, 1]} : vector<16x384xbf16> to vector<16x32xbf16>
    %43 = vector.shape_cast %42 : vector<16x32xbf16> to vector<2x8x32xbf16>
    %44 = vector.extract_strided_slice %37 {offsets = [0, 96], sizes = [16, 32], strides = [1, 1]} : vector<16x384xbf16> to vector<16x32xbf16>
    %45 = vector.shape_cast %44 : vector<16x32xbf16> to vector<2x8x32xbf16>
    %46 = tpu.concatenate %39, %41, %43, %45 in 0 : vector<2x8x32xbf16>, vector<2x8x32xbf16>, vector<2x8x32xbf16>, vector<2x8x32xbf16> -> vector<8x8x32xbf16>
    %47 = vector.extract_strided_slice %37 {offsets = [0, 128], sizes = [16, 32], strides = [1, 1]} : vector<16x384xbf16> to vector<16x32xbf16>
    %48 = vector.shape_cast %47 : vector<16x32xbf16> to vector<2x8x32xbf16>
    %49 = vector.extract_strided_slice %37 {offsets = [0, 160], sizes = [16, 32], strides = [1, 1]} : vector<16x384xbf16> to vector<16x32xbf16>
    %50 = vector.shape_cast %49 : vector<16x32xbf16> to vector<2x8x32xbf16>
    %51 = vector.extract_strided_slice %37 {offsets = [0, 192], sizes = [16, 32], strides = [1, 1]} : vector<16x384xbf16> to vector<16x32xbf16>
    %52 = vector.shape_cast %51 : vector<16x32xbf16> to vector<2x8x32xbf16>
    %53 = vector.extract_strided_slice %37 {offsets = [0, 224], sizes = [16, 32], strides = [1, 1]} : vector<16x384xbf16> to vector<16x32xbf16>
    %54 = vector.shape_cast %53 : vector<16x32xbf16> to vector<2x8x32xbf16>
    %55 = tpu.concatenate %48, %50, %52, %54 in 0 : vector<2x8x32xbf16>, vector<2x8x32xbf16>, vector<2x8x32xbf16>, vector<2x8x32xbf16> -> vector<8x8x32xbf16>
    %56 = vector.extract_strided_slice %37 {offsets = [0, 256], sizes = [16, 32], strides = [1, 1]} : vector<16x384xbf16> to vector<16x32xbf16>
    %57 = vector.shape_cast %56 : vector<16x32xbf16> to vector<2x8x32xbf16>
    %58 = vector.extract_strided_slice %37 {offsets = [0, 288], sizes = [16, 32], strides = [1, 1]} : vector<16x384xbf16> to vector<16x32xbf16>
    %59 = vector.shape_cast %58 : vector<16x32xbf16> to vector<2x8x32xbf16>
    %60 = vector.extract_strided_slice %37 {offsets = [0, 320], sizes = [16, 32], strides = [1, 1]} : vector<16x384xbf16> to vector<16x32xbf16>
    %61 = vector.shape_cast %60 : vector<16x32xbf16> to vector<2x8x32xbf16>
    %62 = vector.extract_strided_slice %37 {offsets = [0, 352], sizes = [16, 32], strides = [1, 1]} : vector<16x384xbf16> to vector<16x32xbf16>
    %63 = vector.shape_cast %62 : vector<16x32xbf16> to vector<2x8x32xbf16>
    %64 = tpu.concatenate %57, %59, %61, %63 in 0 : vector<2x8x32xbf16>, vector<2x8x32xbf16>, vector<2x8x32xbf16>, vector<2x8x32xbf16> -> vector<8x8x32xbf16>
    "tpu.trace_start"() <{level = 10 : i32, message = "bqd,bkd->bqk"}> : () -> ()
    %cst_14 = arith.constant dense<0.000000e+00> : vector<8x8x8xf32>
    %65 = tpu.matmul %46, %55, %cst_14 {dimension_numbers = #tpu.dot_dimension_numbers<[2], [2], [1], [1], [0, 0, 0, 1, 1, 1], [0], [0]>} : vector<8x8x32xbf16>, vector<8x8x32xbf16>, vector<8x8x8xf32> -> vector<8x8x8xf32>
    "tpu.trace_stop"() : () -> ()
    %cst_15 = arith.constant dense<0xFF800000> : vector<8x8xf32>
    %66 = vector.multi_reduction <maximumf>, %65, %cst_15 [2] : vector<8x8x8xf32> to vector<8x8xf32>
    %67 = vector.shape_cast %66 : vector<8x8xf32> to vector<8x8x1xf32>
    %68 = vector.broadcast %67 : vector<8x8x1xf32> to vector<8x8x8xf32>
    %69 = arith.subf %65, %68 : vector<8x8x8xf32>
    %70 = math.exp %69 : vector<8x8x8xf32>
    %cst_16 = arith.constant dense<0.000000e+00> : vector<8x8xf32>
    %71 = vector.multi_reduction <add>, %70, %cst_16 [2] : vector<8x8x8xf32> to vector<8x8xf32>
    %72 = vector.shape_cast %71 : vector<8x8xf32> to vector<8x8x1xf32>
    %73 = tpu.reciprocal %72 {approx = true} : vector<8x8x1xf32> -> vector<8x8x1xf32>
    %74 = vector.broadcast %73 : vector<8x8x1xf32> to vector<8x8x8xf32>
    %75 = arith.mulf %70, %74 : vector<8x8x8xf32>
    %76 = arith.truncf %75 : vector<8x8x8xf32> to vector<8x8x8xbf16>
    "tpu.trace_start"() <{level = 10 : i32, message = "bqk,bkd->bqd"}> : () -> ()
    %cst_17 = arith.constant dense<0.000000e+00> : vector<8x8x32xf32>
    %77 = tpu.matmul %76, %64, %cst_17 {dimension_numbers = #tpu.dot_dimension_numbers<[2], [1], [1], [2], [0, 0, 0, 1, 1, 2], [0], [0]>} : vector<8x8x8xbf16>, vector<8x8x32xbf16>, vector<8x8x32xf32> -> vector<8x8x32xf32>
    "tpu.trace_stop"() : () -> ()
    %78 = arith.truncf %77 : vector<8x8x32xf32> to vector<8x8x32xbf16>
    %79 = vector.extract_strided_slice %78 {offsets = [0, 0, 0], sizes = [2, 8, 32], strides = [1, 1, 1]} : vector<8x8x32xbf16> to vector<2x8x32xbf16>
    %80 = vector.shape_cast %79 : vector<2x8x32xbf16> to vector<16x32xbf16>
    %81 = vector.extract_strided_slice %78 {offsets = [2, 0, 0], sizes = [2, 8, 32], strides = [1, 1, 1]} : vector<8x8x32xbf16> to vector<2x8x32xbf16>
    %82 = vector.shape_cast %81 : vector<2x8x32xbf16> to vector<16x32xbf16>
    %83 = vector.extract_strided_slice %78 {offsets = [4, 0, 0], sizes = [2, 8, 32], strides = [1, 1, 1]} : vector<8x8x32xbf16> to vector<2x8x32xbf16>
    %84 = vector.shape_cast %83 : vector<2x8x32xbf16> to vector<16x32xbf16>
    %85 = vector.extract_strided_slice %78 {offsets = [6, 0, 0], sizes = [2, 8, 32], strides = [1, 1, 1]} : vector<8x8x32xbf16> to vector<2x8x32xbf16>
    %86 = vector.shape_cast %85 : vector<2x8x32xbf16> to vector<16x32xbf16>
    %87 = tpu.concatenate %80, %82, %84, %86 in 1 : vector<16x32xbf16>, vector<16x32xbf16>, vector<16x32xbf16>, vector<16x32xbf16> -> vector<16x128xbf16>
    %c0_18 = arith.constant 0 : index
    %c0_19 = arith.constant 0 : index
    %c0_20 = arith.constant 0 : index
    %88 = vector.load %arg5[%c0_18, %c0_19, %c0_20] : memref<1x128x128xbf16, #tpu.memory_space<vmem>>, vector<1x128x128xbf16>
    %89 = vector.shape_cast %88 : vector<1x128x128xbf16> to vector<128x128xbf16>
    %cst_21 = arith.constant dense<0.000000e+00> : vector<16x128xf32>
    %90 = tpu.matmul %87, %89, %cst_21 {dimension_numbers = #tpu.dot_dimension_numbers<[1], [0], [0], [1], [0, 0, 1, 1], [], []>} : vector<16x128xbf16>, vector<128x128xbf16>, vector<16x128xf32> -> vector<16x128xf32>
    %c0_22 = arith.constant 0 : index
    %c0_23 = arith.constant 0 : index
    %c0_24 = arith.constant 0 : index
    %91 = vector.load %arg6[%c0_22, %c0_23, %c0_24] : memref<1x128x256xbf16, #tpu.memory_space<vmem>>, vector<1x128x256xbf16>
    %92 = vector.shape_cast %91 : vector<1x128x256xbf16> to vector<128x256xbf16>
    %cst_25 = arith.constant dense<0.000000e+00> : vector<16x256xf32>
    %93 = tpu.matmul %33, %92, %cst_25 {dimension_numbers = #tpu.dot_dimension_numbers<[1], [0], [0], [1], [0, 0, 1, 1], [], []>} : vector<16x128xbf16>, vector<128x256xbf16>, vector<16x256xf32> -> vector<16x256xf32>
    %94 = vector.extract_strided_slice %93 {offsets = [0, 0], sizes = [16, 128], strides = [1, 1]} : vector<16x256xf32> to vector<16x128xf32>
    %95 = vector.extract_strided_slice %93 {offsets = [0, 128], sizes = [16, 128], strides = [1, 1]} : vector<16x256xf32> to vector<16x128xf32>
    %96 = arith.negf %95 : vector<16x128xf32>
    %97 = math.exp %96 : vector<16x128xf32>
    %cst_26 = arith.constant 1.000000e+00 : f32
    %98 = vector.broadcast %cst_26 : f32 to vector<16x128xf32>
    %99 = arith.addf %98, %97 : vector<16x128xf32>
    %100 = arith.divf %98, %99 : vector<16x128xf32>
    %101 = arith.mulf %95, %100 : vector<16x128xf32>
    %102 = arith.mulf %101, %94 : vector<16x128xf32>
    %103 = arith.truncf %102 : vector<16x128xf32> to vector<16x128xbf16>
    %c0_27 = arith.constant 0 : index
    %c0_28 = arith.constant 0 : index
    %c0_29 = arith.constant 0 : index
    %104 = vector.load %arg7[%c0_27, %c0_28, %c0_29] : memref<1x128x128xbf16, #tpu.memory_space<vmem>>, vector<1x128x128xbf16>
    %105 = vector.shape_cast %104 : vector<1x128x128xbf16> to vector<128x128xbf16>
    %cst_30 = arith.constant dense<0.000000e+00> : vector<16x128xf32>
    %106 = tpu.matmul %103, %105, %cst_30 {dimension_numbers = #tpu.dot_dimension_numbers<[1], [0], [0], [1], [0, 0, 1, 1], [], []>} : vector<16x128xbf16>, vector<128x128xbf16>, vector<16x128xf32> -> vector<16x128xf32>
    %107 = arith.addf %4, %90 : vector<16x128xf32>
    %108 = arith.addf %107, %106 : vector<16x128xf32>
    %109 = vector.shape_cast %108 : vector<16x128xf32> to vector<2x8x128xf32>
    %c0_31 = arith.constant 0 : index
    %c0_32 = arith.constant 0 : index
    %c0_33 = arith.constant 0 : index
    %110 = vector.load %arg8[%c0_31, %c0_32, %c0_33] : memref<2x8x128xf32, #tpu.memory_space<vmem>>, vector<2x8x128xf32>
    tpu.vector_store %arg8[%c0_31, %c0_32, %c0_33], %109 {strides = array<i32>} : memref<2x8x128xf32, #tpu.memory_space<vmem>>, vector<2x8x128xf32>,
    return
  }
  func.func @transform_0(%arg0: i32, %arg1: i32) -> (i32, i32, i32) {
    %c0_i32 = arith.constant 0 : i32
    %c0_i32_0 = arith.constant 0 : i32
    %c0_i32_1 = arith.constant 0 : i32
    return %arg0, %c0_i32, %c0_i32_0 : i32, i32, i32
  }
  func.func @transform_1(%arg0: i32, %arg1: i32) -> (i32, i32, i32) {
    %c0_i32 = arith.constant 0 : i32
    %c0_i32_0 = arith.constant 0 : i32
    %c0_i32_1 = arith.constant 0 : i32
    return %arg1, %c0_i32, %c0_i32_0 : i32, i32, i32
  }
  func.func @transform_2(%arg0: i32, %arg1: i32) -> (i32, i32, i32) {
    %c0_i32 = arith.constant 0 : i32
    %c0_i32_0 = arith.constant 0 : i32
    %c0_i32_1 = arith.constant 0 : i32
    return %arg1, %c0_i32, %c0_i32_0 : i32, i32, i32
  }
  func.func @transform_3(%arg0: i32, %arg1: i32) -> (i32, i32, i32) {
    %c0_i32 = arith.constant 0 : i32
    %c0_i32_0 = arith.constant 0 : i32
    %c0_i32_1 = arith.constant 0 : i32
    return %arg1, %c0_i32, %c0_i32_0 : i32, i32, i32
  }
  func.func @transform_4(%arg0: i32, %arg1: i32) -> (i32, i32, i32) {
    %c0_i32 = arith.constant 0 : i32
    %c0_i32_0 = arith.constant 0 : i32
    %c0_i32_1 = arith.constant 0 : i32
    return %arg1, %c0_i32, %c0_i32_0 : i32, i32, i32
  }
  func.func @transform_5(%arg0: i32, %arg1: i32) -> (i32, i32, i32) {
    %c0_i32 = arith.constant 0 : i32
    %c0_i32_0 = arith.constant 0 : i32
    %c0_i32_1 = arith.constant 0 : i32
    return %arg1, %c0_i32, %c0_i32_0 : i32, i32, i32
  }
  func.func @transform_6(%arg0: i32, %arg1: i32) -> (i32, i32, i32) {
    %c0_i32 = arith.constant 0 : i32
    %c0_i32_0 = arith.constant 0 : i32
    %c0_i32_1 = arith.constant 0 : i32
    return %arg0, %c0_i32, %c0_i32_0 : i32, i32, i32
  }
}

</mosaic_0001>

<bundles_post_ra>
// kernel: tpu_custom_call.1
= control target key start
LH: loop header
LB: loop body
LE: loop exit
PB: predicated region body
PF: predicated region fallthrough
CT: control target
= control target key end

     0   :  { %s3662_s0 = inlined_call_operand.hbm [shape: f32[2,8,128], index: 0, kind: input, shape index: {}]   ;;  %s3663_s1 = inlined_call_operand.vmem [shape: f32[2,1,128], index: 1, kind: input, shape index: {}]   ;;  %s3664_s2 = inlined_call_operand.hbm [shape: bf16[2,128,384], index: 2, kind: input, shape index: {}]   ;;  %s3665_s3 = inlined_call_operand.hbm [shape: bf16[2,128,128], index: 3, kind: input, shape index: {}]   ;;  %s3666_s4 = inlined_call_operand.hbm [shape: bf16[2,128,256], index: 4, kind: input, shape index: {}]   ;;  %s3667_s5 = inlined_call_operand.hbm [shape: bf16[2,128,128], index: 5, kind: input, shape index: {}]   ;;  %s3668_s6 = inlined_call_operand.hbm [shape: f32[2,8,128], index: 6, kind: output, shape index: {}]  }
   0x1   :  { %3681 = sst [smem:[#allocation19_spill]] %s3664_s2 }
   0x2   :  { %3682 = sst [smem:[#allocation20_spill]] %s3666_s4 }
   0x3   :  { %11 = vsyncpa [#allocation3], 0 }
   0x4   :  { %12 = vsyncpa [#allocation6], 0 }
   0x5   :  { %14 = vsyncpa [#allocation6 + $0x1], 0 }
   0x6   :  { %15 = vsyncpa [#allocation9], 0 }
   0x7   :  { %17 = vsyncpa [#allocation9 + $0x1], 0 }
   0x8   :  { %18 = vsyncpa [#allocation4], 0  ;;  %s3047_s21 = smov 0   ;;  %s3049_s22 = smov 0  }
   0x9   :  { %s3051_s23 = smov 0   ;;  %s3053_s24 = smov 0  }
   0xa   :  { %s3055_s25 = smov 0   ;;  %s3057_s26 = smov 0  }
   0xb LB: > { %3683 = sst [smem:[#allocation16_spill]] %s2978_s23  ;;  %s33_s27 = sadd.s32 1, %s2986_s25  ;;  %s2990_s26 = sphi %s3057_s26, %s24_s26   ;;  %s2986_s25 = sphi %s3055_s25, %s3708_s25   ;;  %s2982_s24 = sphi %s3053_s24, %s3707_s24   ;;  %s2978_s23 = sphi %s3051_s23, %s3703_s23   ;;  %s2974_s22 = sphi %s3049_s22, %s3706_s22   ;;  %s2970_s21 = sphi %s3047_s21, %s3705_s21  }
   0xc   : > { %s95_s28 = sadd.s32 1, %s2978_s23  ;;  %p34_p0 = scmp.ge.s32.totalorder %s33_s27, 2 }
   0xd   : > { %p102_p1 = scmp.ne.s32.totalorder %s2978_s23, %s2974_s22  ;;  %p103_p2 = scmp.eq.s32.totalorder %s2990_s26, 0 }
   0xe   : > { %s3710_s27 = smov (%p34_p0, %s33_s27), 0  ;;  %p2568_p4 = scmp.lt.s32.totalorder %s2990_s26, 2 }
   0xf   : > { %3684 = sst [smem:[#allocation17_spill]] %s3710_s27  ;;  %p104_p3 = por %p103_p2, %p102_p1 }
  0x10   : > { %s92_s29 = ssub.s32 %s2986_s25, %s3710_s27  ;;  %s258_s30 = sand.u32 1, %s2990_s26  }
  0x11   : > { %p93_p5 = scmp.eq.s32.totalorder %s92_s29, 0  ;;  %s3089_s7 = sand.u32 1, %s2978_s23  }
  0x12   : > { %s2532_s8 = smul.u32 3072, %s2986_s25  ;;  %s3686_s2 = sld [smem:[#allocation19_spill]] }
  0x13   : > { %s3093_s9 = scalar_select %p93_p5, %s2978_s23, %s95_s28  }
  0x14   : > { %s2531_s10 = smul.u32 192, %s3089_s7  ;;  %p3101_p6 = pnand %p2568_p4, %p104_p3 }
  0x15   : > { %3685 = sst [smem:[#allocation18_spill]] %s3093_s9  ;;  %s3109_s17 = scalar_lea.sflag [#allocation6], %s258_s30 }
  0x16   : > { %s3687_s14 = scalar_select %p3101_p6, 1, 0 }
  0x17   : > { %s262_s15 = scalar_lea.vmem [#allocation5], %s2531_s10  ;;  %p3115_p8 = pneg %p3101_p6 }
  0x18   : > { %s3099_s13 = scalar_lea.hbm %s3686_s2, %s2532_s8  ;;  %s269_s16 = sshll.u32 %s262_s15, 4  ;;  %s3105_s16 = int_to_ptr.vmem [resolvable:$true] %s269_s16 }
  0x19   : > { %s2754_s18 = scalar_lea.hbm %s3099_s13, 3072  ;;  %s2759_s29 = scalar_lea.hbm %s3686_s2, 6144 }
  0x1a   : > { %p2755_p7 = scmp.ne.s32.totalorder %s3099_s13, %s2754_s18  ;;  %p2760_p11 = scmp.lt.u32.totalorder %s3099_s13, %s3686_s2 }
  0x1b   : > { %s3688_s19 = scalar_select %p3115_p8, 1, 0 }
  0x1c   : > { %p2757_p9 = pnand %p3115_p8, %p2755_p7  ;;  %p2761_p12 = scmp.lt.u32.totalorder %s2759_s29, %s2754_s18 }
  0x1d   : > { %p2763_p0 = scmp.lt.u32.totalorder %s2754_s18, %s3099_s13 }
  0x1e   : > { %p2758_p10 = pneg %p2757_p9  ;;  %p2762_p13 = por %p2761_p12, %p2760_p11 }
  0x20   : > { %p2764_p1 = por %p2763_p0, %p2762_p13 }
  0x22   : > { %p2765_p2 = pnand %p2764_p1, %p2758_p10 }
  0x24   : > { %2768 = shalt.err (!%p2765_p2)
}
  0x25   : > { %s2769_s11 = scalar_lea.vmem %s3105_s16, 3072  ;;  %s2992_s12 = smov [#allocation5]  }
  0x26   : > { %p2770_p3 = scmp.ne.s32.totalorder %s3105_s16, %s2769_s11  ;;  %s2774_s15 = sshll.u32 %s2992_s12, 4  ;;  %s2775_s15 = int_to_ptr.vmem [resolvable:$false] %s2774_s15 }
  0x27   : > { %s2776_s20 = scalar_lea.vmem %s2775_s15, 6144  ;;  %p2777_p7 = scmp.lt.s32.totalorder %s3105_s16, %s2775_s15 }
  0x28   : > { %p2772_p4 = pnand %p2770_p3, %p3115_p8  ;;  %p2778_p9 = scmp.lt.s32.totalorder %s2776_s20, %s2769_s11 }
  0x2a   : > { %p2773_p5 = pneg %p2772_p4  ;;  %p2779_p11 = por %p2778_p9, %p2777_p7 }
  0x2c   : > { %p2780_p12 = pnand %p2779_p11, %p2773_p5 }
  0x2e   : > { %2783 = shalt.err (!%p2780_p12)
}
  0x2f   : > { %s2993_s18 = smov 192   ;;  %s2994_s28 = smov 12  }
  0x30   : > { %2557 = dma.hbm_to_vmem [thread:$0]  (!%p3101_p6), %s3099_s13, 3072, %s3105_s16, %s3109_s17, %s2993_s18, %s2993_s18, %s2994_s28  }
  0x31   : > { %s2195_s29 = sshll.u32 %s3089_s7, 7  ;;  %s2298_s8 = sshll.u32 %s2986_s25, 11 }
  0x32   : > { %s3689_s4 = sld [smem:[#allocation20_spill]]  ;;  %s304_s15 = scalar_lea.vmem [#allocation8], %s2195_s29 }
  0x33   : > { %s311_s20 = sshll.u32 %s304_s15, 4  ;;  %s3150_s2 = scalar_lea.sflag [#allocation9], %s258_s30  ;;  %s3146_s20 = int_to_ptr.vmem [resolvable:$true] %s311_s20 }
  0x38   : > { %s3144_s11 = scalar_lea.hbm %s3689_s4, %s2298_s8  ;;  %s2789_s18 = scalar_lea.hbm %s3689_s4, 4096 }
  0x39   : > { %s2784_s27 = scalar_lea.hbm %s3144_s11, 2048  ;;  %p2790_p1 = scmp.lt.u32.totalorder %s3144_s11, %s3689_s4 }
  0x3a   : > { %p2785_p10 = scmp.ne.s32.totalorder %s3144_s11, %s2784_s27  ;;  %p2791_p2 = scmp.lt.u32.totalorder %s2789_s18, %s2784_s27 }
  0x3b   : > { %p2793_p4 = scmp.lt.u32.totalorder %s2784_s27, %s3144_s11 }
  0x3c   : > { %p2787_p13 = pnand %p2785_p10, %p3115_p8  ;;  %p2792_p3 = por %p2791_p2, %p2790_p1 }
  0x3e   : > { %p2788_p0 = pneg %p2787_p13  ;;  %p2794_p5 = por %p2793_p4, %p2792_p3 }
  0x40   : > { %p2795_p7 = pnand %p2794_p5, %p2788_p0 }
  0x42   : > { %2798 = shalt.err (!%p2795_p7)
}
  0x43   : > { %s2799_s30 = scalar_lea.vmem %s3146_s20, 2048  ;;  %s2995_s29 = smov [#allocation8]  }
  0x44   : > { %p2800_p9 = scmp.ne.s32.totalorder %s3146_s20, %s2799_s30  ;;  %s2804_s10 = sshll.u32 %s2995_s29, 4  ;;  %s2805_s10 = int_to_ptr.vmem [resolvable:$false] %s2804_s10 }
  0x45   : > { %s2806_s12 = scalar_lea.vmem %s2805_s10, 4096  ;;  %p2807_p10 = scmp.lt.s32.totalorder %s3146_s20, %s2805_s10 }
  0x46   : > { %p2802_p11 = pnand %p2800_p9, %p3115_p8  ;;  %p2808_p13 = scmp.lt.s32.totalorder %s2806_s12, %s2799_s30 }
  0x48   : > { %p2803_p12 = pneg %p2802_p11  ;;  %p2809_p1 = por %p2808_p13, %p2807_p10 }
  0x4a   : > { %p2810_p2 = pnand %p2809_p1, %p2803_p12 }
  0x4c   : > { %2813 = shalt.err (!%p2810_p2)
}
  0x4d   : > { %s3670_s27 = smov 128   ;;  %s3671_s15 = smov 8  }
  0x4e   : > { %2563 = dma.hbm_to_vmem [thread:$0]  (!%p3101_p6), %s3144_s11, 2048, %s3146_s20, %s3150_s2, %s3670_s27, %s3670_s27, %s3671_s15  }
  0x4f   : > { %s3178_s13 = sadd.s32 4294967295, %s2990_s26   ;;  %p108_p0 = scmp.ne.s32.totalorder %s2974_s22, %s2970_s21 }
  0x50   : > { %p3674_p3 = scmp.eq.s32.totalorder %s3178_s13, 0  ;;  %p2188_p4 = scmp.ge.s32.totalorder %s2990_s26, 1 }
  0x51   : > { %p223_p5 = scmp.lt.s32.totalorder %s2990_s26, 3  ;;  %s2998_s11 = smov [#allocation2]  }
  0x52   : > { %p3187_p7 = por %p3674_p3, %p108_p0  ;;  %s238_s20 = sshll.u32 %s2998_s11, 4  ;;  %s3195_s20 = int_to_ptr.vmem [resolvable:$true] %s238_s20 }
  0x53   : > { %p3191_p9 = pnand %p2188_p4, %p223_p5  ;;  %s3672_s28 = sshll.u32 %s3089_s7, 6 }
  0x54   : > { %s3690_s16 = scalar_select %p3187_p7, 1, 0 }
  0x55   : > { %s3691_s18 = scalar_select %p3191_p9, 1, 0 }
  0x56   : > { %p2550_p11 = pneg %p3191_p9  ;;  %s2297_s21 = sshll.u32 %s2986_s25, 10 }
  0x57   : > { %s283_s8 = scalar_lea.vmem [#allocation7], %s3672_s28  ;;  %s3214_s11 = scalar_lea.hbm %s3665_s3, %s2297_s21 }
  0x58   : > { %s290_s30 = sshll.u32 %s283_s8, 4  ;;  %p3205_p12 = pnand %p2550_p11, %p3674_p3  ;;  %s3216_s30 = int_to_ptr.vmem [resolvable:$true] %s290_s30 }
  0x59   : > { %s2814_s4 = scalar_lea.hbm %s3662_s0, 256 }
  0x5a   : > { %p2815_p10 = scmp.ne.s32.totalorder %s3662_s0, %s2814_s4  ;;  %p2816_p13 = pneg %p3205_p12 }
  0x5b   : > { %p2821_p0 = scmp.lt.u32.totalorder %s2814_s4, %s3662_s0 }
  0x5c   : > { %p2817_p1 = pnand %p2816_p13, %p2815_p10 }
  0x5e   : > { %p2818_p2 = pneg %p2817_p1 }
  0x60   : > { %p2823_p4 = pnand %p2821_p0, %p2818_p2 }
  0x62   : > { %2826 = shalt.err (!%p2823_p4)
}
  0x63   : > { %s2827_s10 = scalar_lea.vmem %s3195_s20, 256  ;;  %p2835_p7 = scmp.lt.s32.totalorder %s3195_s20, %s3195_s20 }
  0x64   : > { %p2828_p5 = scmp.ne.s32.totalorder %s3195_s20, %s2827_s10  ;;  %p2836_p9 = scmp.lt.s32.totalorder %s2827_s10, %s2827_s10 }
  0x66   : > { %p2830_p11 = pnand %p2828_p5, %p2816_p13  ;;  %p2837_p6 = por %p2836_p9, %p2835_p7 }
  0x68   : > { %p2831_p3 = pneg %p2830_p11 }
  0x6a   : > { %p2838_p8 = pnand %p2837_p6, %p2831_p3 }
  0x6c   : > { %2841 = shalt.err (!%p2838_p8)
}
  0x6d   : > { %s3693_s27 = smov 8   ;;  %s3694_s23 = smov 128  }
  0x6e   : > { %2553 = dma.hbm_to_vmem [thread:$0]  (!%p3205_p12), %s3662_s0, 256, %s3195_s20, [#allocation3], %s3694_s23, %s3694_s23, %s3693_s27  }
  0x6f   : > { %s2842_s15 = scalar_lea.hbm %s3214_s11, 1024  ;;  %p3695_p7 = scmp.ne.s32.totalorder %s3688_s19, 0 }
  0x70   : > { %p2843_p10 = scmp.ne.s32.totalorder %s3214_s11, %s2842_s15  ;;  %s2847_s12 = scalar_lea.hbm %s3665_s3, 2048 }
  0x71   : > { %p2848_p3 = scmp.lt.u32.totalorder %s3214_s11, %s3665_s3  ;;  %p2849_p9 = scmp.lt.u32.totalorder %s2847_s12, %s2842_s15 }
  0x72   : > { %p2845_p6 = pnand %p2843_p10, %p3695_p7  ;;  %p2851_p1 = scmp.lt.u32.totalorder %s2842_s15, %s3214_s11 }
  0x73   : > { %p2850_p13 = por %p2849_p9, %p2848_p3 }
  0x74   : > { %p2846_p8 = pneg %p2845_p6 }
  0x75   : > { %p2852_p2 = por %p2851_p1, %p2850_p13 }
  0x77   : > { %p2853_p0 = pnand %p2852_p2, %p2846_p8 }
  0x79   : > { %2856 = shalt.err (!%p2853_p0)
}
  0x7a   : > { %s2857_s20 = scalar_lea.vmem %s3216_s30, 1024  ;;  %s2999_s27 = smov [#allocation7]  }
  0x7b   : > { %p2858_p12 = scmp.ne.s32.totalorder %s3216_s30, %s2857_s20  ;;  %s2862_s23 = sshll.u32 %s2999_s27, 4  ;;  %s2863_s23 = int_to_ptr.vmem [resolvable:$false] %s2862_s23 }
  0x7c   : > { %s2864_s4 = scalar_lea.vmem %s2863_s23, 2048  ;;  %p2865_p11 = scmp.lt.s32.totalorder %s3216_s30, %s2863_s23 }
  0x7d   : > { %p2860_p4 = pnand %p2858_p12, %p3695_p7  ;;  %p2866_p10 = scmp.lt.s32.totalorder %s2864_s4, %s2857_s20 }
  0x7f   : > { %p2861_p5 = pneg %p2860_p4  ;;  %p2867_p6 = por %p2866_p10, %p2865_p11 }
  0x81   : > { %p2868_p3 = pnand %p2867_p6, %p2861_p5 }
  0x83   : > { %2871 = shalt.err (!%p2868_p3)
}
  0x84   : > { %s3000_s9 = smov 64   ;;  %s3001_s15 = smov 4  }
  0x85   : > { %p3696_p8 = scmp.ne.s32.totalorder %s3687_s14, 0  ;;  %s3272_s12 = scalar_lea.hbm %s3667_s5, %s2297_s21 }
  0x86   : > { %s3697_s8 = sshll.u32 %s3089_s7, 6  ;;  %s2872_s27 = scalar_lea.hbm %s3272_s12, 1024 }
  0x87   : > { %2560 = dma.hbm_to_vmem [thread:$0]  (!%p3696_p8), %s3214_s11, 1024, %s3216_s30, %s3109_s17, %s3000_s9, %s3000_s9, %s3001_s15  }
  0x88   : > { %s325_s10 = scalar_lea.vmem [#allocation10], %s3697_s8  ;;  %p2873_p9 = scmp.ne.s32.totalorder %s3272_s12, %s2872_s27 }
  0x89   : > { %s332_s20 = sshll.u32 %s325_s10, 4  ;;  %s2877_s11 = scalar_lea.hbm %s3667_s5, 2048  ;;  %s3276_s20 = int_to_ptr.vmem [resolvable:$true] %s332_s20 }
  0x8a   : > { %p2875_p13 = pnand %p2873_p9, %p3695_p7  ;;  %p2878_p2 = scmp.lt.u32.totalorder %s3272_s12, %s3667_s5 }
  0x8b   : > { %p2879_p0 = scmp.lt.u32.totalorder %s2877_s11, %s2872_s27  ;;  %p2881_p4 = scmp.lt.u32.totalorder %s2872_s27, %s3272_s12 }
  0x8c   : > { %p2876_p1 = pneg %p2875_p13 }
  0x8d   : > { %p2880_p12 = por %p2879_p0, %p2878_p2 }
  0x8f   : > { %p2882_p5 = por %p2881_p4, %p2880_p12 }
  0x91   : > { %p2883_p11 = pnand %p2882_p5, %p2876_p1 }
  0x93   : > { %2886 = shalt.err (!%p2883_p11)
}
  0x94   : > { %s2887_s7 = scalar_lea.vmem %s3276_s20, 1024  ;;  %s3002_s4 = smov [#allocation10]  }
  0x95   : > { %p2888_p10 = scmp.ne.s32.totalorder %s3276_s20, %s2887_s7  ;;  %s2892_s28 = sshll.u32 %s3002_s4, 4  ;;  %s2893_s28 = int_to_ptr.vmem [resolvable:$false] %s2892_s28 }
  0x96   : > { %s2894_s29 = scalar_lea.vmem %s2893_s28, 2048  ;;  %p2895_p9 = scmp.lt.s32.totalorder %s3276_s20, %s2893_s28 }
  0x97   : > { %p2890_p6 = pnand %p2888_p10, %p3695_p7  ;;  %p2896_p13 = scmp.lt.s32.totalorder %s2894_s29, %s2887_s7 }
  0x99   : > { %p2891_p3 = pneg %p2890_p6  ;;  %p2897_p2 = por %p2896_p13, %p2895_p9 }
  0x9b   : > { %p2898_p0 = pnand %p2897_p2, %p2891_p3 }
  0x9d   : > { %2901 = shalt.err (!%p2898_p0)
}
  0x9e   : > { %2566 = dma.hbm_to_vmem [thread:$0]  (!%p3696_p8), %s3272_s12, 1024, %s3276_s20, %s3150_s2, %s3000_s9, %s3000_s9, %s3001_s15  }
  0x9f   : > { %p3698_p7 = scmp.ne.s32.totalorder %s3691_s18, 0 }
  0xa0   : > { %p3699_p1 = scmp.eq.s32.totalorder (!%p3698_p7), %s3178_s13, 0 }
  0xa1   : > { %344 = sbr.rel (%p3698_p7) target bundleno = 1752 (0x6d8), region = 44 }
  0xa8   : > { %2953 = dma.done.wait (%p3699_p1), [#allocation3], 256   ;;  %p3700_p12 = pmov %p3699_p1 }
  0xa9   : > { %s350_s14 = sand.u32 1, %s3178_s13   ;;  %s352_s19 = sand.u32 1, %s2974_s22  }
  0xaa   : > { %2955 = vsyncadd (%p3700_p12), [#allocation3], 4294967040  ;;  %s2533_s8 = smul.u32 192, %s352_s19  ;;  %s351_s10 = scalar_lea.sflag [#allocation6], %s350_s14 }
  0xab   : > { %p3701_p4 = scmp.ne.s32.totalorder %s3690_s16, 0 }
  0xac   : > { %s3311_s27 = scalar_lea.vmem [#allocation5], %s2533_s8 }
  0xad   : > { %2957 = dma.done.wait (%p3701_p4), %s351_s10, 4096  }
  0xae   : > { %2959 = vsyncadd (%p3701_p4), %s351_s10, 4294963200  ;;  %s2203_s2 = sshll.u32 %s352_s19, 6  ;;  %s2204_s18 = sshll.u32 %s352_s19, 7 }
  0xaf   : > { %s3317_s9 = scalar_lea.vmem [#allocation7], %s2203_s2  ;;  %s369_s15 = scalar_lea.sflag [#allocation9], %s350_s14 }
  0xb0   : > { %s3319_s12 = scalar_lea.vmem [#allocation8], %s2204_s18 }
  0xb1   : > { %2961 = dma.done.wait (%p3701_p4), %s369_s15, 3072  }
  0xb2   : > { %2963 = vsyncadd (%p3701_p4), %s369_s15, 4294964224  ;;  %p424_p8 = scmp.lt.s32.totalorder %s2982_s24, 1  ;;  %s3333_s21 = scalar_lea.vmem [#allocation10], %s2203_s2 }
  0xb3   : > { %p2206_p5 = scmp.ne.s32.totalorder %s2982_s24, 0 }
  0xb4   : > { %s3327_s20 = scalar_select %p424_p8, %s2982_s24, 1 }
  0xb5   : > { %432 = sbr.rel (%p2206_p5) target bundleno = 188 (0xbc), region = 68  ;;  %v433_v0 = vld [vmem:[#allocation2] sm:$0xff] (!%p2206_p5)  ;;  %v434_v1 = vld [vmem:[#allocation2 + $0x8] sm:$0xff] (!%p2206_p5) }
  0xb6   : > { %s426_s11 = scalar_lea.vmem %s3663_s1, %s3327_s20  ;;  %435 = vst [vmem:[#allocation11] sm:$0xff] (!%p2206_p5), %v433_v0  ;;  %436 = vst [vmem:[#allocation11 + $0x8] sm:$0xff] (!%p2206_p5), %v434_v1 }
  0xbc PF: > { %v2636_v2 = vld [vmem:[%s3311_s27 + $0x4] ss:$12 sps:$4 sm:$0xff]   ;;  %v2638_v3 = vld [vmem:[%s3311_s27] ss:$12 sps:$4 sm:$0xff]   ;;  %v3003_v4 = vmov 0   ;;  %v3004_v5 = vmov 0.0  }
  0xbd   : > { %671 = vmatprep.mubr.bf16.mxu0 %v3003_v4  ;;  %2369 = vmatprep.subr.bf16.mxu1 %v3004_v5  ;;  %v2639_v6 = vld [vmem:[%s3311_s27 + $0x1c] ss:$12 sps:$4 sm:$0xff]   ;;  %v2641_v7 = vld [vmem:[%s3311_s27 + $0x18] ss:$12 sps:$4 sm:$0xff]   ;;  %v2642_v8 = vld [vmem:[%s3311_s27 + $0x34] ss:$12 sps:$4 sm:$0xff]  }
  0xbe   : > { %639 = vmatprep.subr.bf16.mxu0 %v2636_v2  ;;  %v2644_v9 = vld [vmem:[%s3311_s27 + $0x30] ss:$12 sps:$4 sm:$0xff]   ;;  %v2645_v10 = vld [vmem:[%s3311_s27 + $0x4c] ss:$12 sps:$4 sm:$0xff]   ;;  %v2647_v11 = vld [vmem:[%s3311_s27 + $0x48] ss:$12 sps:$4 sm:$0xff]  }
  0xbf   : > { %640 = vmatpush1.bf16.msra.mxu0 %v2638_v3  ;;  %v2648_v12 = vld [vmem:[%s3311_s27 + $0x64] ss:$12 sps:$4 sm:$0xff]   ;;  %v2660_v13 = vld [vmem:[%s3311_s27 + $0x8] ss:$12 sps:$4 sm:$0xff]   ;;  %v2661_v14 = vld [vmem:[%s3311_s27 + $0x20] ss:$12 sps:$4 sm:$0xff]  }
  0xc0   : > { %641 = vmatprep.subr.bf16.mxu0 %v2639_v6  ;;  %2370 = vmatpush3.bf16.msra.mxu1 %v2660_v13  ;;  %v2650_v15 = vld [vmem:[%s3311_s27 + $0x60] ss:$12 sps:$4 sm:$0xff]   ;;  %v2651_v16 = vld [vmem:[%s3311_s27 + $0x7c] ss:$12 sps:$4 sm:$0xff]   ;;  %v2653_v17 = vld [vmem:[%s3311_s27 + $0x78] ss:$12 sps:$4 sm:$0xff]  }
  0xc1   : > { %2371 = vmatprep.subr.bf16.mxu1 %v3004_v5  ;;  %v2662_v18 = vld [vmem:[%s3311_s27 + $0x38] ss:$12 sps:$4 sm:$0xff]   ;;  %v2654_v19 = vld [vmem:[%s3311_s27 + $0x94] ss:$12 sps:$4 sm:$0xff]   ;;  %v2663_v20 = vld [vmem:[%s3311_s27 + $0x50] ss:$12 sps:$4 sm:$0xff]  }
  0xc2   : > { %v2656_v21 = vld [vmem:[%s3311_s27 + $0x90] ss:$12 sps:$4 sm:$0xff]   ;;  %v2657_v22 = vld [vmem:[%s3311_s27 + $0xac] ss:$12 sps:$4 sm:$0xff]   ;;  %v2664_v23 = vld [vmem:[%s3311_s27 + $0x68] ss:$12 sps:$4 sm:$0xff]  }
  0xc3   : > { %642 = vmatpush1.bf16.msra.mxu0 %v2641_v7  ;;  %v2659_v24 = vld [vmem:[%s3311_s27 + $0xa8] ss:$12 sps:$4 sm:$0xff]   ;;  %v3362_v25 = vld [vmem:[#allocation11] sm:$0xff]  ;;  %v2667_v30 = vld [vmem:[%s3311_s27 + $0xb0] ss:$12 sps:$4 sm:$0xff]   ;;  %vm3005_vm0 = vmmov 0  }
  0xc4   : > { %643 = vmatprep.subr.bf16.mxu0 %v2642_v8  ;;  %2372 = vmatpush3.bf16.msra.mxu1 %v2661_v14  ;;  %v3364_v26 = vld [vmem:[#allocation11 + $0x8] sm:$0xff]  ;;  %v2666_v29 = vld [vmem:[%s3311_s27 + $0x98] ss:$12 sps:$4 sm:$0xff]   ;;  %vm777_vm1 = vcmask 261120   ;;  %s3006_s24 = smov 96   ;;  %s3007_s16 = smov 64  }
  0xc5   : > { %2373 = vmatprep.subr.bf16.mxu1 %v3004_v5  ;;  %v2665_v27 = vld [vmem:[%s3311_s27 + $0x80] ss:$12 sps:$4 sm:$0xff]   ;;  %v439_v28 = vpack.c.bf16 %v3364_v26, %v3362_v25  ;;  %2385 = vmatprep.mubr.msk.bf16.mxu1 %vm3005_vm0, %v3004_v5  ;;  %s3008_s23 = smov 32   ;;  %vm1246_vm2 = vcmask 1043456   ;;  %vm1146_vm3 = vcmask 64512   ;;  %vm1649_vm5 = vcmask 523264  }
  0xc6   : > { %vm1652_vm6 = vcmask 785408   ;;  %s3009_s28 = smov [#allocation11]   ;;  %p2570_p11 = scmp.eq.s32.totalorder %s3178_s13, 1 }
  0xc7   : > { %644 = vmatpush1.bf16.msra.mxu0 %v2644_v9  ;;  %s2037_s29 = sshll.u32 %s3009_s28, 4  ;;  %s2038_s29 = int_to_ptr.vmem [resolvable:$true] %s2037_s29 }
  0xc8   : > { %645 = vmatprep.subr.bf16.mxu0 %v2645_v10  ;;  %2374 = vmatpush3.bf16.msra.mxu1 %v2662_v18  ;;  %s2902_s14 = scalar_lea.vmem %s2038_s29, 256  ;;  %p2909_p9 = scmp.lt.s32.totalorder %s2038_s29, %s2038_s29 }
  0xc9   : > { %2375 = vmatprep.subr.bf16.mxu1 %v3004_v5  ;;  %p2903_p10 = scmp.ne.s32.totalorder %s2038_s29, %s2902_s14  ;;  %p2910_p13 = scmp.lt.s32.totalorder %s2902_s14, %s2902_s14 }
  0xcb   : > { %646 = vmatpush1.bf16.msra.mxu0 %v2647_v11  ;;  %p2904_p6 = pnand %p2903_p10, %p2570_p11  ;;  %p2911_p2 = por %p2910_p13, %p2909_p9 }
  0xcc   : > { %647 = vmatprep.subr.bf16.mxu0 %v2648_v12  ;;  %2376 = vmatpush3.bf16.msra.mxu1 %v2663_v20 }
  0xcd   : > { %2377 = vmatprep.subr.bf16.mxu1 %v3004_v5  ;;  %p2905_p3 = pneg %p2904_p6 }
  0xcf   : > { %648 = vmatpush1.bf16.msra.mxu0 %v2650_v15  ;;  %p2912_p0 = pnand %p2911_p2, %p2905_p3 }
  0xd0   : > { %649 = vmatprep.subr.bf16.mxu0 %v2651_v16  ;;  %2378 = vmatpush3.bf16.msra.mxu1 %v2664_v23 }
  0xd1   : > { %2379 = vmatprep.subr.bf16.mxu1 %v3004_v5 }
  0xd3   : > { %650 = vmatpush1.bf16.msra.mxu0 %v2653_v17 }
  0xd4   : > { %651 = vmatprep.subr.bf16.mxu0 %v2654_v19  ;;  %2380 = vmatpush3.bf16.msra.mxu1 %v2665_v27 }
  0xd5   : > { %2381 = vmatprep.subr.bf16.mxu1 %v3004_v5 }
  0xd7   : > { %652 = vmatpush1.bf16.msra.mxu0 %v2656_v21 }
  0xd8   : > { %653 = vmatprep.subr.bf16.mxu0 %v2657_v22  ;;  %2382 = vmatpush3.bf16.msra.mxu1 %v2666_v29 }
  0xd9   : > { %2383 = vmatprep.subr.bf16.mxu1 %v3004_v5 }
  0xdb   : > { %654 = vmatpush1.bf16.msra.mxu0 %v2659_v24 }
  0xdc   : > { %2413 = vmatprep.subr.bf16.mxu0 %v3004_v5  ;;  %2384 = vmatpush3.bf16.msra.mxu1 %v2667_v30 }
  0xdd   : > { %2389 = vmatprep.subr.bf16.mxu1 %v3004_v5 }
  0xde   : > { %672 = vmatmul.mubr.bf16.vlgmr.msra.gmra.mrb[0].mxu0 %v439_v28 }
  0xdf   : > { %2415 = vmatprep.mubr.msk.bf16.mxu0 %vm3005_vm0, %v3004_v5  ;;  %2386 = vmatmul.mubr.bf16.vlgmr.msra.gmra.mrb[0].mxu1 %v439_v28 }
  0xe0   : > { %2391 = vmatprep.mubr.msk.bf16.mxu1 %vm3005_vm0, %v3004_v5 }
 0x1b1   : > { %v673_v31 = vpop.f32.mrb[0].mxu0 }
 0x1b2   : > { %v675_v32 = vpop.f32.mrb[1].mxu0  ;;  %v2300_v38 = vpack.c.bf16 %v673_v31, %v673_v31  ;;  %v716_v41 = vpop.f32.mrb[0].mxu1 }
 0x1b3   : > { %v2302_v33 = vpack.c.bf16 %v675_v32, %v675_v32  ;;  %v677_v34 = vpop.f32.mrb[2].mxu0  ;;  %v2387_v42 = vpop.f32.mrb[1].mxu1  ;;  %v3423_v59 = vpack.c.bf16 %v716_v41, %v716_v41 }
 0x1b4   : > { %v679_v35 = vpop.f32.mrb[3].mxu0  ;;  %v2301_v39 = vpack.c.bf16 %v677_v34, %v677_v34  ;;  %v719_v43 = vpop.f32.mrb[2].mxu1 }
 0x1b5   : > { %v2303_v36 = vpack.c.bf16 %v679_v35, %v679_v35  ;;  %748 = vrot.lane.b32.xlu0 %v2302_v33, %s3006_s24  ;;  %v782_v37 = vsel %vm777_vm1, %v2302_v33, 0  ;;  %v2388_v44 = vpop.f32.mrb[3].mxu1  ;;  %v1248_v62 = vsel %vm1246_vm2, %v3423_v59, 0  ;;  %v3433_v0 = vpack.c.bf16 %v719_v43, %v719_v43 }
 0x1b6   : > { %2390 = vmatpush3.bf16.xpose.msra.mxu1 %v782_v37 }
 0x1b7   : > { %750 = vrot.lane.b32.xlu1 %v2303_v36, %s3006_s24  ;;  %2395 = vmatprep.subr.bf16.mxu1 %v3004_v5  ;;  %v828_v40 = vsel %vm777_vm1, %v2303_v36, 0  ;;  %v1294_v1 = vsel %vm1246_vm2, %v3433_v0, 0 }
 0x1b9   : > { %731 = vrot.lane.b32.xlu0 %v2300_v38, %s3006_s24 }
 0x1bb   : > { %733 = vrot.lane.b32.xlu1 %v2301_v39, %s3006_s24 }
 0x1bd   : > { %752 = vrot.lane.b32.xlu0 %v2302_v33, %s3007_s16  ;;  %2392 = vmatmul.mubr.msk.bf16.vlgmr.msra.gmra.mrb[4].mxu1 %vm777_vm1, %v2300_v38 }
 0x1be   : > { %2396 = vmatpush3.bf16.xpose.msra.mxu1 %v828_v40  ;;  %2397 = vmatprep.mubr.msk.bf16.mxu1 %vm3005_vm0, %v3004_v5 }
 0x1bf   : > { %754 = vrot.lane.b32.xlu1 %v2303_v36, %s3007_s16  ;;  %2401 = vmatprep.subr.bf16.mxu1 %v3004_v5 }
 0x1c1   : > { %735 = vrot.lane.b32.xlu0 %v2300_v38, %s3007_s16 }
 0x1c3   : > { %737 = vrot.lane.b32.xlu1 %v2301_v39, %s3007_s16 }
 0x1c5   : > { %756 = vrot.lane.b32.xlu0 %v2302_v33, %s3008_s23  ;;  %2398 = vmatmul.mubr.msk.bf16.vlgmr.msra.gmra.mrb[8].mxu1 %vm777_vm1, %v2301_v39 }
 0x1c6   : > { %2403 = vmatprep.mubr.msk.bf16.mxu1 %vm3005_vm0, %v3004_v5 }
 0x1c7   : > { %758 = vrot.lane.b32.xlu1 %v2303_v36, %s3008_s23 }
 0x1c9   : > { %739 = vrot.lane.b32.xlu0 %v2300_v38, %s3008_s23 }
 0x1cb   : > { %741 = vrot.lane.b32.xlu1 %v2301_v39, %s3008_s23 }
 0x227   : > { %v749_v45 = vpop.permute.xlu0 %748 }
 0x228   : > { %v874_v46 = vsel %vm777_vm1, %v749_v45, 0 }
 0x229   : > { %v751_v47 = vpop.permute.xlu1 %750  ;;  %2402 = vmatpush3.bf16.xpose.msra.mxu1 %v874_v46 }
 0x22a   : > { %2407 = vmatprep.subr.bf16.mxu1 %v3004_v5  ;;  %v920_v51 = vsel %vm777_vm1, %v751_v47, 0 }
 0x22b   : > { %v732_v48 = vpop.permute.xlu0 %731 }
 0x22d   : > { %v734_v49 = vpop.permute.xlu1 %733 }
 0x22f   : > { %v753_v50 = vpop.permute.xlu0 %752 }
 0x230   : > { %v966_v52 = vsel %vm777_vm1, %v753_v50, 0  ;;  %2404 = vmatmul.mubr.msk.bf16.vlgmr.msra.gmra.mrb[12].mxu1 %vm777_vm1, %v732_v48 }
 0x231   : > { %2414 = vmatpush3.bf16.xpose.msra.mxu0 %v966_v52  ;;  %v755_v53 = vpop.permute.xlu1 %754  ;;  %2408 = vmatpush3.bf16.xpose.msra.mxu1 %v920_v51 }
 0x232   : > { %2409 = vmatprep.mubr.msk.bf16.mxu1 %vm3005_vm0, %v3004_v5  ;;  %2419 = vmatprep.subr.bf16.mxu1 %v3004_v5  ;;  %v1012_v57 = vsel %vm777_vm1, %v755_v53, 0 }
 0x233   : > { %v736_v54 = vpop.permute.xlu0 %735  ;;  %2425 = vmatprep.subr.bf16.mxu0 %v3004_v5 }
 0x235   : > { %v738_v55 = vpop.permute.xlu1 %737 }
 0x237   : > { %v757_v56 = vpop.permute.xlu0 %756 }
 0x238   : > { %v1058_v58 = vsel %vm777_vm1, %v757_v56, 0  ;;  %2410 = vmatmul.mubr.msk.bf16.vlgmr.msra.gmra.mrb[16].mxu1 %vm777_vm1, %v734_v49  ;;  %2416 = vmatmul.mubr.msk.bf16.vlgmr.msra.gmra.mrb[4].mxu0 %vm777_vm1, %v736_v54 }
 0x239   : > { %2426 = vmatpush3.bf16.xpose.msra.mxu0 %v1058_v58  ;;  %2420 = vmatpush3.bf16.xpose.msra.mxu1 %v1012_v57  ;;  %v759_v60 = vpop.permute.xlu1 %758 }
 0x23a   : > { %2421 = vmatprep.mubr.msk.bf16.mxu1 %vm3005_vm0, %v3004_v5  ;;  %2427 = vmatprep.mubr.msk.bf16.mxu0 %vm3005_vm0, %v3004_v5  ;;  %v1104_v63 = vsel %vm777_vm1, %v759_v60, 0 }
 0x23b   : > { %2431 = vmatprep.subr.bf16.mxu1 %v3004_v5  ;;  %2437 = vmatprep.subr.bf16.mxu0 %v3004_v5  ;;  %v740_v61 = vpop.permute.xlu0 %739 }
 0x23d   : > { %v742_v2 = vpop.permute.xlu1 %741 }
 0x240   : > { %2422 = vmatmul.mubr.msk.bf16.vlgmr.msra.gmra.mrb[20].mxu1 %vm777_vm1, %v738_v55  ;;  %2428 = vmatmul.mubr.msk.bf16.vlgmr.msra.gmra.mrb[8].mxu0 %vm777_vm1, %v740_v61 }
 0x241   : > { %2432 = vmatpush3.bf16.xpose.msra.mxu1 %v1104_v63  ;;  %2433 = vmatprep.mubr.msk.bf16.mxu1 %vm3005_vm0, %v3004_v5 }
 0x242   : > { %2443 = vmatprep.subr.bf16.mxu1 %v3004_v5  ;;  %2438 = vmatpush3.bf16.msra.mxu0 %v1248_v62 }
 0x243   : > { %2439 = vmatprep.mubr.msk.bf16.mxu0 %vm3005_vm0, %v3004_v5  ;;  %2449 = vmatprep.subr.bf16.mxu0 %v3004_v5 }
 0x248   : > { %2434 = vmatmul.mubr.msk.bf16.vlgmr.msra.gmra.mrb[24].mxu1 %vm777_vm1, %v742_v2 }
 0x249   : > { %2444 = vmatpush3.bf16.msra.mxu1 %v1294_v1  ;;  %2445 = vmatprep.mubr.msk.bf16.mxu1 %vm3005_vm0, %v3004_v5 }
 0x24a   : > { %2455 = vmatprep.subr.bf16.mxu1 %v3004_v5 }
 0x290   : > { %v818_v3 = vpop.f32.mrb[4].mxu1 }
 0x291   : > { %v2393_v6 = vpop.f32.mrb[5].mxu1  ;;  %v1147_v7 = vsel %vm1146_vm3, %v818_v3, -inf }
 0x292   : > { %1148 = vmax.xlane.f32.xlu0 %v1147_v7  ;;  %v821_v8 = vpop.f32.mrb[6].mxu1 }
 0x293   : > { %v2394_v9 = vpop.f32.mrb[7].mxu1 }
 0x298   : > { %v864_v10 = vpop.f32.mrb[8].mxu1 }
 0x299   : > { %v2399_v11 = vpop.f32.mrb[9].mxu1  ;;  %v1150_v12 = vsel %vm1146_vm3, %v864_v10, -inf }
 0x29a   : > { %1151 = vmax.xlane.f32.xlu1 %v1150_v12  ;;  %v867_v13 = vpop.f32.mrb[10].mxu1 }
 0x29b   : > { %v2400_v14 = vpop.f32.mrb[11].mxu1 }
 0x303   : > { %v910_v15 = vpop.f32.mrb[12].mxu1 }
 0x304   : > { %v2405_v16 = vpop.f32.mrb[13].mxu1  ;;  %v1153_v17 = vsel %vm1146_vm3, %v910_v15, -inf }
 0x305   : > { %1154 = vmax.xlane.f32.xlu0 %v1153_v17  ;;  %v913_v18 = vpop.f32.mrb[14].mxu1 }
 0x306   : > { %v2406_v19 = vpop.f32.mrb[15].mxu1 }
 0x30b   : > { %v956_v20 = vpop.f32.mrb[16].mxu1  ;;  %v1002_v21 = vpop.f32.mrb[4].mxu0 }
 0x30c   : > { %v2411_v22 = vpop.f32.mrb[17].mxu1  ;;  %v2417_v23 = vpop.f32.mrb[5].mxu0  ;;  %v1159_v24 = vsel %vm1146_vm3, %v1002_v21, -inf  ;;  %v1156_v27 = vsel %vm1146_vm3, %v956_v20, -inf }
 0x30d   : > { %v1005_v28 = vpop.f32.mrb[6].mxu0  ;;  %1160 = vmax.xlane.f32.xlu1 %v1159_v24  ;;  %1157 = vmax.xlane.f32.xlu0 %v1156_v27  ;;  %v959_v29 = vpop.f32.mrb[18].mxu1 }
 0x30e   : > { %v2412_v30 = vpop.f32.mrb[19].mxu1  ;;  %v2418_v31 = vpop.f32.mrb[7].mxu0 }
 0x313   : > { %v3450_v32 = vpop.f32.mrb[20].mxu1  ;;  %v3452_v33 = vpop.f32.mrb[8].mxu0 }
 0x314   : > { %v2423_v34 = vpop.f32.mrb[21].mxu1  ;;  %v2429_v35 = vpop.f32.mrb[9].mxu0  ;;  %v1165_v36 = vsel %vm1146_vm3, %v3452_v33, -inf  ;;  %v1162_v37 = vsel %vm1146_vm3, %v3450_v32, -inf }
 0x315   : > { %v1097_v38 = vpop.f32.mrb[10].mxu0  ;;  %1166 = vmax.xlane.f32.xlu1 %v1165_v36  ;;  %1163 = vmax.xlane.f32.xlu0 %v1162_v37  ;;  %v1051_v39 = vpop.f32.mrb[22].mxu1 }
 0x316   : > { %v2424_v40 = vpop.f32.mrb[23].mxu1  ;;  %v2430_v41 = vpop.f32.mrb[11].mxu0 }
 0x317   : > { %v440_v41 = vlaneseq }
 0x319   : > { %445 = vadd.xlane.f32.xlu1 %v3362_v25 }
 0x31b   : > { %v1140_v42 = vpop.f32.mrb[24].mxu1 }
 0x31c   : > { %v2435_v43 = vpop.f32.mrb[25].mxu1  ;;  %v1168_v44 = vsel %vm1146_vm3, %v1140_v42, -inf }
 0x31d   : > { %1169 = vmax.xlane.f32.xlu0 %v1168_v44  ;;  %v1143_v45 = vpop.f32.mrb[26].mxu1  ;;  %v441_v43 = vand.u32 127, %v440_v41 }
 0x31e   : > { %v2436_v46 = vpop.f32.mrb[27].mxu1 }
 0x31f   : > { %v1149_v50 = vpop.xlane.xlu0 %1148  ;;  %vm442_vm4 = vcmp.lt.s32.totalorder %v441_v43, 32 }
 0x320   : > { %v1171_v53 = vsub.f32 %v818_v3, %v1149_v50 }
 0x321   : > { %447 = vadd.xlane.f32.xlu0 %v3364_v26 }
 0x322   : > { %v1179_v54 = vmul.f32 1.442695, %v1171_v53 }
 0x327   : > { %v1152_v47 = vpop.xlane.xlu1 %1151 }
 0x328   : > { %v1172_v48 = vsub.f32 %v864_v10, %v1152_v47  ;;  %v2207_v47 = vsel %vm442_vm4, 1.0, %v3004_v5 }
 0x32a   : > { %v1181_v49 = vmul.f32 1.442695, %v1172_v48  ;;  %765 = vrot.lane.b32.xlu1 %v3423_v59, %s3006_s24 }
 0x32c   : > { %2708 = vpow2.f32 %v1181_v49 }
 0x32d   : > { %2710 = vpow2.f32 %v1179_v54 }
 0x336   : > { %v2709_v51 = vpop.eup %2708 }
 0x337   : > { %v1198_v52 = vsel %vm1146_vm3, %v2709_v51, 0.0  ;;  %v2711_v55 = vpop.eup %2710 }
 0x338   : > { %1199 = vadd.xlane.f32.xlu0 %v1198_v52  ;;  %v1195_v56 = vsel %vm1146_vm3, %v2711_v55, 0.0 }
 0x34e   : > { %1196 = vadd.xlane.f32.xlu1 %v1195_v56 }
 0x392   : > { %v1155_v57 = vpop.xlane.xlu0 %1154 }
 0x393   : > { %v1173_v58 = vsub.f32 %v910_v15, %v1155_v57 }
 0x395   : > { %v1183_v60 = vmul.f32 1.442695, %v1173_v58 }
 0x397   : > { %2712 = vpow2.f32 %v1183_v60 }
 0x39a   : > { %v1161_v61 = vpop.xlane.xlu1 %1160  ;;  %v1158_v62 = vpop.xlane.xlu0 %1157 }
 0x39b   : > { %v1175_v63 = vsub.f32 %v1002_v21, %v1161_v61  ;;  %v1174_v1 = vsub.f32 %v956_v20, %v1158_v62 }
 0x39d   : > { %v1187_v2 = vmul.f32 1.442695, %v1175_v63  ;;  %v1185_v6 = vmul.f32 1.442695, %v1174_v1 }
 0x39f   : > { %2714 = vpow2.f32 %v1187_v2 }
 0x3a0   : > { %2716 = vpow2.f32 %v1185_v6 }
 0x3a1   : > { %v3465_v3 = vpop.eup %2712 }
 0x3a2   : > { %v1201_v7 = vsel %vm1146_vm3, %v3465_v3, 0.0  ;;  %v1164_v12 = vpop.xlane.xlu0 %1163  ;;  %v1167_v16 = vpop.xlane.xlu1 %1166 }
 0x3a3   : > { %1202 = vadd.xlane.f32.xlu1 %v1201_v7  ;;  %v1176_v17 = vsub.f32 %v3450_v32, %v1164_v12  ;;  %v1177_v18 = vsub.f32 %v3452_v33, %v1167_v16  ;;  %v2670_v16 = vld [vmem:[%s3319_s12 + $0x4] ss:$8 sps:$4 sm:$0xff]  }
 0x3a5   : > { %v1189_v19 = vmul.f32 1.442695, %v1176_v17  ;;  %v1191_v24 = vmul.f32 1.442695, %v1177_v18 }
 0x3a6   : > { %v446_v22 = vpop.xlane.xlu1 %445 }
 0x3a7   : > { %v449_v44 = vmul.f32 0.03125, %v446_v22  ;;  %v2668_v22 = vld [vmem:[%s3319_s12] ss:$8 sps:$4 sm:$0xff]  }
 0x3a9   : > { %v3469_v8 = vpop.eup %2714  ;;  %v451_v46 = vsub.f32 %v3362_v25, %v449_v44 }
 0x3aa   : > { %v3471_v9 = vpop.eup %2716  ;;  %v1207_v10 = vsel %vm1146_vm3, %v3469_v8, 0.0  ;;  %v1170_v13 = vpop.xlane.xlu0 %1169 }
 0x3ab   : > { %1208 = vadd.xlane.f32.xlu1 %v1207_v10  ;;  %v1204_v11 = vsel %vm1146_vm3, %v3471_v9, 0.0  ;;  %v1178_v20 = vsub.f32 %v1140_v42, %v1170_v13  ;;  %v766_v29 = vpop.permute.xlu1 %765  ;;  %v3514_v49 = vmul.f32 %v2207_v47, %v451_v46 }
 0x3ac   : > { %1205 = vadd.xlane.f32.xlu0 %v1204_v11  ;;  %v1340_v40 = vsel %vm1246_vm2, %v766_v29, 0  ;;  %v2674_v29 = vld [vmem:[%s3319_s12 + $0x20] ss:$8 sps:$4 sm:$0xff]  }
 0x3ad   : > { %v1193_v27 = vmul.f32 1.442695, %v1178_v20 }
 0x3ae   : > { %v448_v14 = vpop.xlane.xlu0 %447 }
 0x3af   : > { %v450_v42 = vmul.f32 0.03125, %v448_v14 }
 0x3b1   : > { %v452_v45 = vsub.f32 %v3364_v26, %v450_v42 }
 0x3b3   : > { %v3512_v48 = vmul.f32 %v2207_v47, %v452_v45 }
 0x3bc   : > { %769 = vrot.lane.b32.xlu1 %v3423_v59, %s3007_s16 }
 0x3c0   : > { %771 = vrot.lane.b32.xlu1 %v3433_v0, %s3007_s16 }
 0x3c2   : > { %767 = vrot.lane.b32.xlu0 %v3433_v0, %s3006_s24 }
 0x3c5   : > { %v1200_v15 = vpop.xlane.xlu0 %1199 }
 0x3c6   : > { %2718 = vrcp.f32 %v1200_v15 }
 0x3c7   : > { %2720 = vpow2.f32 %v1189_v19 }
 0x3c8   : > { %2722 = vpow2.f32 %v1191_v24  ;;  %v2673_v24 = vld [vmem:[%s3319_s12 + $0x14] ss:$8 sps:$4 sm:$0xff]  }
 0x3c9   : > { %2724 = vpow2.f32 %v1193_v27  ;;  %v2671_v27 = vld [vmem:[%s3319_s12 + $0x10] ss:$8 sps:$4 sm:$0xff]  }
 0x3d0   : > { %v2719_v21 = vpop.eup %2718 }
 0x3d1   : > { %v1228_v23 = vmul.f32 %v2719_v21, %v2709_v51  ;;  %v3488_v31 = vpop.eup %2720 }
 0x3d2   : > { %v3490_v32 = vpop.eup %2722  ;;  %v1210_v33 = vsel %vm1146_vm3, %v3488_v31, 0.0 }
 0x3d3   : > { %v1236_v28 = vpack.c.bf16 %v1228_v23, %v1228_v23  ;;  %v3494_v34 = vpop.eup %2724  ;;  %v1213_v35 = vsel %vm1146_vm3, %v3490_v32, 0.0 }
 0x3d4   : > { %v1216_v36 = vsel %vm1146_vm3, %v3494_v34, 0.0 }
 0x3d5   : > { %2446 = vmatmul.mubr.msk.bf16.vlgmr.msra.gmra.mrb[28].mxu1 %vm1146_vm3, %v1236_v28  ;;  %v2676_v28 = vld [vmem:[%s3319_s12 + $0x24] ss:$8 sps:$4 sm:$0xff]  }
 0x3d6   : > { %2457 = vmatprep.mubr.msk.bf16.mxu1 %vm3005_vm0, %v3004_v5 }
 0x3db   : > { %v1197_v30 = vpop.xlane.xlu1 %1196 }
 0x3dc   : > { %2726 = vrcp.f32 %v1197_v30  ;;  %v2679_v30 = vld [vmem:[%s3319_s12 + $0x34] ss:$8 sps:$4 sm:$0xff]  }
 0x3e1   : > { %1211 = vadd.xlane.f32.xlu0 %v1210_v33  ;;  %v2680_v33 = vld [vmem:[%s3319_s12 + $0x40] ss:$8 sps:$4 sm:$0xff]  }
 0x3e4   : > { %1214 = vadd.xlane.f32.xlu1 %v1213_v35  ;;  %v2688_v35 = vld [vmem:[%s3319_s12 + $0x64] ss:$8 sps:$4 sm:$0xff]  }
 0x3e5   : > { %1217 = vadd.xlane.f32.xlu0 %v1216_v36  ;;  %v2686_v36 = vld [vmem:[%s3319_s12 + $0x60] ss:$8 sps:$4 sm:$0xff]  }
 0x3e6   : > { %v2727_v37 = vpop.eup %2726 }
 0x3e7   : > { %v1227_v38 = vmul.f32 %v2727_v37, %v2711_v55  ;;  %v2691_v37 = vld [vmem:[%s3319_s12 + $0x74] ss:$8 sps:$4 sm:$0xff]  }
 0x3e9   : > { %v1235_v39 = vpack.c.bf16 %v1227_v38, %v1227_v38  ;;  %v2689_v38 = vld [vmem:[%s3319_s12 + $0x70] ss:$8 sps:$4 sm:$0xff]  }
 0x3eb   : > { %2440 = vmatmul.mubr.msk.bf16.vlgmr.msra.gmra.mrb[12].mxu0 %vm1146_vm3, %v1235_v39 }
 0x3ec   : > { %2450 = vmatpush3.bf16.msra.mxu0 %v1340_v40  ;;  %2451 = vmatprep.mubr.msk.bf16.mxu0 %vm3005_vm0, %v3004_v5 }
 0x3ed   : > { %2461 = vmatprep.subr.bf16.mxu0 %v3004_v5 }
 0x3f5   : > { %775 = vrot.lane.b32.xlu1 %v3433_v0, %s3008_s23  ;;  %v456_v0 = vmul.f32 %v3512_v48, %v3512_v48 }
 0x3fb   : > { %773 = vrot.lane.b32.xlu0 %v3423_v59, %s3008_s23  ;;  %v455_v59 = vmul.f32 %v3514_v49, %v3514_v49 }
 0x419   : > { %459 = vadd.xlane.f32.xlu1 %v456_v0 }
 0x41a   : > { %457 = vadd.xlane.f32.xlu0 %v455_v59 }
 0x430   : > { %v1203_v50 = vpop.xlane.xlu1 %1202 }
 0x431   : > { %2728 = vrcp.f32 %v1203_v50  ;;  %v2208_v50 = vld [vmem:[%s426_s11] ss:$0 sm:$0xff] }
 0x438   : > { %v1209_v26 = vpop.xlane.xlu1 %1208 }
 0x439   : > { %2730 = vrcp.f32 %v1209_v26  ;;  %v1206_v51 = vpop.xlane.xlu0 %1205 }
 0x43a   : > { %2732 = vrcp.f32 %v1206_v51 }
 0x43b   : > { %v2729_v25 = vpop.eup %2728 }
 0x43c   : > { %v1229_v52 = vmul.f32 %v2729_v25, %v3465_v3  ;;  %v770_v53 = vpop.permute.xlu1 %769 }
 0x43d   : > { %v768_v54 = vpop.permute.xlu0 %767  ;;  %v1432_v57 = vsel %vm1246_vm2, %v770_v53, 0 }
 0x43e   : > { %v1386_v55 = vsel %vm1246_vm2, %v768_v54, 0  ;;  %v1237_v56 = vpack.c.bf16 %v1229_v52, %v1229_v52 }
 0x43f   : > { %2456 = vmatpush3.bf16.msra.mxu1 %v1386_v55 }
 0x440   : > { %2452 = vmatmul.mubr.msk.bf16.vlgmr.msra.gmra.mrb[16].mxu0 %vm1146_vm3, %v1237_v56  ;;  %2467 = vmatprep.subr.bf16.mxu1 %v3004_v5  ;;  %v772_v63 = vpop.permute.xlu1 %771 }
 0x441   : > { %2462 = vmatpush3.bf16.msra.mxu0 %v1432_v57  ;;  %2463 = vmatprep.mubr.msk.bf16.mxu0 %vm3005_vm0, %v3004_v5  ;;  %v1478_v6 = vsel %vm1246_vm2, %v772_v63, 0 }
 0x442   : > { %2473 = vmatprep.subr.bf16.mxu0 %v3004_v5 }
 0x443   : > { %v2731_v58 = vpop.eup %2730 }
 0x444   : > { %v2733_v60 = vpop.eup %2732  ;;  %v1231_v61 = vmul.f32 %v2731_v58, %v3469_v8 }
 0x445   : > { %v1230_v62 = vmul.f32 %v2733_v60, %v3471_v9 }
 0x446   : > { %v1239_v1 = vpack.c.bf16 %v1231_v61, %v1231_v61 }
 0x447   : > { %v1238_v2 = vpack.c.bf16 %v1230_v62, %v1230_v62 }
 0x448   : > { %2464 = vmatmul.mubr.msk.bf16.vlgmr.msra.gmra.mrb[20].mxu0 %vm1146_vm3, %v1239_v1 }
 0x449   : > { %2458 = vmatmul.mubr.msk.bf16.vlgmr.msra.gmra.mrb[32].mxu1 %vm1146_vm3, %v1238_v2  ;;  %2475 = vmatprep.mubr.msk.bf16.mxu0 %vm3005_vm0, %v3004_v5 }
 0x44a   : > { %2468 = vmatpush3.bf16.msra.mxu1 %v1478_v6  ;;  %2469 = vmatprep.mubr.msk.bf16.mxu1 %vm3005_vm0, %v3004_v5 }
 0x44b   : > { %2479 = vmatprep.subr.bf16.mxu1 %v3004_v5 }
 0x46e   : > { %v1212_v3 = vpop.xlane.xlu0 %1211 }
 0x46f   : > { %2734 = vrcp.f32 %v1212_v3 }
 0x471   : > { %v1215_v7 = vpop.xlane.xlu1 %1214 }
 0x472   : > { %2736 = vrcp.f32 %v1215_v7  ;;  %v1218_v8 = vpop.xlane.xlu0 %1217 }
 0x473   : > { %2738 = vrcp.f32 %v1218_v8 }
 0x475   : > { %v776_v13 = vpop.permute.xlu1 %775 }
 0x476   : > { %v774_v9 = vpop.permute.xlu0 %773  ;;  %v1570_v19 = vsel %vm1246_vm2, %v776_v13, 0  ;;  %v2694_v13 = vld [vmem:[%s3317_s9 + $0x10] sm:$0xff]  }
 0x477   : > { %v1524_v10 = vsel %vm1246_vm2, %v774_v9, 0 }
 0x478   : > { %2474 = vmatpush3.bf16.msra.mxu0 %v1524_v10 }
 0x479   : > { %v2735_v11 = vpop.eup %2734  ;;  %2485 = vmatprep.subr.bf16.mxu0 %v3004_v5 }
 0x47a   : > { %v1232_v12 = vmul.f32 %v2735_v11, %v3488_v31  ;;  %v2677_v31 = vld [vmem:[%s3319_s12 + $0x30] ss:$8 sps:$4 sm:$0xff]   ;;  %v2692_v11 = vld [vmem:[%s3317_s9] sm:$0xff]  }
 0x47c   : > { %v2737_v14 = vpop.eup %2736  ;;  %v1240_v15 = vpack.c.bf16 %v1232_v12, %v1232_v12  ;;  %v2693_v12 = vld [vmem:[%s3317_s9 + $0x8] sm:$0xff]  }
 0x47d   : > { %v2739_v17 = vpop.eup %2738  ;;  %v1233_v18 = vmul.f32 %v2737_v14, %v3490_v32  ;;  %v2682_v32 = vld [vmem:[%s3319_s12 + $0x44] ss:$8 sps:$4 sm:$0xff]   ;;  %v2695_v14 = vld [vmem:[%s3317_s9 + $0x18] sm:$0xff]  }
 0x47e   : > { %2470 = vmatmul.mubr.msk.bf16.vlgmr.msra.gmra.mrb[36].mxu1 %vm1146_vm3, %v1240_v15  ;;  %v1234_v21 = vmul.f32 %v2739_v17, %v3494_v34  ;;  %v2685_v34 = vld [vmem:[%s3319_s12 + $0x54] ss:$8 sps:$4 sm:$0xff]   ;;  %v2696_v15 = vld [vmem:[%s3317_s9 + $0x20] sm:$0xff]  }
 0x47f   : > { %2480 = vmatpush3.bf16.msra.mxu1 %v1570_v19  ;;  %v1241_v20 = vpack.c.bf16 %v1233_v18, %v1233_v18  ;;  %2481 = vmatprep.mubr.msk.bf16.mxu1 %vm3005_vm0, %v3004_v5  ;;  %v2698_v17 = vld [vmem:[%s3317_s9 + $0x30] sm:$0xff]   ;;  %v2699_v18 = vld [vmem:[%s3317_s9 + $0x38] sm:$0xff]  }
 0x480   : > { %1857 = vmatprep.subr.bf16.mxu1 %v2670_v16  ;;  %v1242_v23 = vpack.c.bf16 %v1234_v21, %v1234_v21  ;;  %v2697_v16 = vld [vmem:[%s3317_s9 + $0x28] sm:$0xff]  }
 0x481   : > { %2476 = vmatmul.mubr.msk.bf16.vlgmr.msra.gmra.mrb[24].mxu0 %vm1146_vm3, %v1241_v20 }
 0x482   : > { %2501 = vmatprep.mubr.msk.bf16.mxu0 %vm3005_vm0, %v3004_v5  ;;  %2486 = vmatpush3.bf16.msra.mxu0 %v2692_v11 }
 0x483   : > { %2487 = vmatprep.subr.bf16.mxu0 %v3004_v5 }
 0x486   : > { %2482 = vmatmul.mubr.msk.bf16.vlgmr.msra.gmra.mrb[40].mxu1 %vm1146_vm3, %v1242_v23  ;;  %2488 = vmatpush3.bf16.msra.mxu0 %v2693_v12 }
 0x487   : > { %1858 = vmatpush1.bf16.msra.mxu1 %v2668_v22  ;;  %1889 = vmatprep.mubr.bf16.mxu1 %v3003_v4  ;;  %v2683_v4 = vld [vmem:[%s3319_s12 + $0x50] ss:$8 sps:$4 sm:$0xff]  }
 0x488   : > { %1859 = vmatprep.subr.bf16.mxu1 %v2673_v24  ;;  %2489 = vmatprep.subr.bf16.mxu0 %v3004_v5 }
 0x48a   : > { %2490 = vmatpush3.bf16.msra.mxu0 %v2694_v13 }
 0x48b   : > { %1860 = vmatpush1.bf16.msra.mxu1 %v2671_v27  ;;  %2491 = vmatprep.subr.bf16.mxu0 %v3004_v5 }
 0x48c   : > { %1861 = vmatprep.subr.bf16.mxu1 %v2676_v28 }
 0x48e   : > { %2492 = vmatpush3.bf16.msra.mxu0 %v2695_v14 }
 0x48f   : > { %1862 = vmatpush1.bf16.msra.mxu1 %v2674_v29  ;;  %2493 = vmatprep.subr.bf16.mxu0 %v3004_v5 }
 0x490   : > { %1863 = vmatprep.subr.bf16.mxu1 %v2679_v30 }
 0x492   : > { %2494 = vmatpush3.bf16.msra.mxu0 %v2696_v15 }
 0x493   : > { %1864 = vmatpush1.bf16.msra.mxu1 %v2677_v31  ;;  %2495 = vmatprep.subr.bf16.mxu0 %v3004_v5 }
 0x494   : > { %1865 = vmatprep.subr.bf16.mxu1 %v2682_v32 }
 0x496   : > { %2496 = vmatpush3.bf16.msra.mxu0 %v2697_v16 }
 0x497   : > { %1866 = vmatpush1.bf16.msra.mxu1 %v2680_v33  ;;  %2497 = vmatprep.subr.bf16.mxu0 %v3004_v5 }
 0x498   : > { %1867 = vmatprep.subr.bf16.mxu1 %v2685_v34 }
 0x49a   : > { %2498 = vmatpush3.bf16.msra.mxu0 %v2698_v17 }
 0x49b   : > { %1868 = vmatpush1.bf16.msra.mxu1 %v2683_v4  ;;  %2499 = vmatprep.subr.bf16.mxu0 %v3004_v5 }
 0x49c   : > { %1869 = vmatprep.subr.bf16.mxu1 %v2688_v35 }
 0x49e   : > { %2500 = vmatpush3.bf16.msra.mxu0 %v2699_v18 }
 0x49f   : > { %1870 = vmatpush1.bf16.msra.mxu1 %v2686_v36  ;;  %2505 = vmatprep.subr.bf16.mxu0 %v3004_v5 }
 0x4a0   : > { %1871 = vmatprep.subr.bf16.mxu1 %v2691_v37 }
 0x4a3   : > { %1872 = vmatpush1.bf16.msra.mxu1 %v2689_v38 }
 0x4a6   : > { %v460_v39 = vpop.xlane.xlu1 %459 }
 0x4a7   : > { %v462_v40 = vmul.f32 0.03125, %v460_v39  ;;  %v458_v41 = vpop.xlane.xlu0 %457 }
 0x4a8   : > { %v461_v42 = vmul.f32 0.03125, %v458_v41  ;;  %v3568_v43 = vpop.f32.mrb[28].mxu1 }
 0x4a9   : > { %v464_v44 = vadd.f32 1e-05, %v462_v40  ;;  %v2447_v45 = vpop.f32.mrb[29].mxu1 }
 0x4aa   : > { %v463_v46 = vadd.f32 1e-05, %v461_v42  ;;  %v1333_v47 = vpop.f32.mrb[30].mxu1 }
 0x4ab   : > { %2740 = vrsqrt.f32 %v464_v44  ;;  %v2448_v0 = vpop.f32.mrb[31].mxu1 }
 0x4ac   : > { %2742 = vrsqrt.f32 %v463_v46 }
 0x4b5   : > { %v2741_v59 = vpop.eup %2740 }
 0x4b6   : > { %v2743_v26 = vpop.eup %2742  ;;  %v468_v51 = vmul.f32 %v2741_v59, %v3512_v48 }
 0x4b7   : > { %v467_v25 = vmul.f32 %v2743_v26, %v3514_v49 }
 0x4b8   : > { %v477_v52 = vmul.f32 %v2208_v50, %v468_v51 }
 0x4b9   : > { %v476_v53 = vmul.f32 %v2208_v50, %v467_v25 }
 0x4bb   : > { %v478_v54 = vpack.c.bf16 %v477_v52, %v476_v53  ;;  %v2700_v53 = vld [vmem:[%s3333_s21] sm:$0xff]  }
 0x4bd   : > { %1890 = vmatmul.mubr.bf16.vlgmr.msra.gmra.mrb[44].mxu1 %v478_v54 }
 0x4be   : > { %v3577_v55 = vpop.f32.mrb[12].mxu0 }
 0x4bf   : > { %v2306_v56 = vpack.c.bf16 %v3568_v43, %v3577_v55  ;;  %v2441_v57 = vpop.f32.mrb[13].mxu0  ;;  %v2702_v43 = vld [vmem:[%s3333_s21 + $0x10] sm:$0xff]   ;;  %v2703_v55 = vld [vmem:[%s3333_s21 + $0x18] sm:$0xff]  }
 0x4c0   : > { %v1287_v58 = vpop.f32.mrb[14].mxu0 }
 0x4c1   : > { %v2442_v60 = vpop.f32.mrb[15].mxu0 }
 0x4c2   : > { %v2701_v60 = vld [vmem:[%s3333_s21 + $0x8] sm:$0xff]  }
 0x513   : > { %v1376_v61 = vpop.f32.mrb[16].mxu0 }
 0x514   : > { %v2453_v62 = vpop.f32.mrb[17].mxu0 }
 0x515   : > { %v1379_v63 = vpop.f32.mrb[18].mxu0  ;;  %v2706_v62 = vld [vmem:[%s3333_s21 + $0x30] sm:$0xff]  }
 0x516   : > { %v2454_v48 = vpop.f32.mrb[19].mxu0  ;;  %v2707_v63 = vld [vmem:[%s3333_s21 + $0x38] sm:$0xff]  }
 0x51b   : > { %v1468_v49 = vpop.f32.mrb[20].mxu0 }
 0x51c   : > { %v1422_v1 = vpop.f32.mrb[32].mxu1  ;;  %v2465_v2 = vpop.f32.mrb[21].mxu0 }
 0x51d   : > { %v2307_v6 = vpack.c.bf16 %v1422_v1, %v1376_v61  ;;  %v2459_v3 = vpop.f32.mrb[33].mxu1  ;;  %v1471_v7 = vpop.f32.mrb[22].mxu0  ;;  %v2705_v61 = vld [vmem:[%s3333_s21 + $0x28] sm:$0xff]  }
 0x51e   : > { %v1425_v8 = vpop.f32.mrb[34].mxu1  ;;  %v2466_v9 = vpop.f32.mrb[23].mxu0  ;;  %v2753_v3 = vld [vmem:[#allocation11 + $0x8] sm:$0xff] }
 0x51f   : > { %1630 = vrot.lane.b32.xlu0 %v2307_v6, %s3008_s23  ;;  %v2460_v10 = vpop.f32.mrb[35].mxu1 }
 0x551   : > { %v1514_v19 = vpop.f32.mrb[36].mxu1 }
 0x552   : > { %v2308_v20 = vpack.c.bf16 %v1514_v19, %v1468_v49  ;;  %v2471_v21 = vpop.f32.mrb[37].mxu1  ;;  %v2752_v49 = vld [vmem:[#allocation11] sm:$0xff] }
 0x553   : > { %v1517_v22 = vpop.f32.mrb[38].mxu1 }
 0x554   : > { %1637 = vrot.lane.b32.xlu1 %v2308_v20, %s3007_s16  ;;  %v2472_v23 = vpop.f32.mrb[39].mxu1  ;;  %v1560_v24 = vpop.f32.mrb[24].mxu0 }
 0x555   : > { %v2477_v27 = vpop.f32.mrb[25].mxu0 }
 0x556   : > { %v1563_v28 = vpop.f32.mrb[26].mxu0 }
 0x557   : > { %v2478_v29 = vpop.f32.mrb[27].mxu0 }
 0x559   : > { %v1606_v30 = vpop.f32.mrb[40].mxu1 }
 0x55a   : > { %v2309_v31 = vpack.c.bf16 %v1606_v30, %v1560_v24  ;;  %v2483_v32 = vpop.f32.mrb[41].mxu1 }
 0x55b   : > { %v1609_v33 = vpop.f32.mrb[42].mxu1 }
 0x55c   : > { %1644 = vrot.lane.b32.xlu0 %v2309_v31, %s3006_s24  ;;  %v2484_v34 = vpop.f32.mrb[43].mxu1 }
 0x590   : > { %v1891_v4 = vpop.f32.mrb[44].mxu1 }
 0x591   : > { %v1893_v35 = vpop.f32.mrb[45].mxu1  ;;  %v1631_v51 = vpop.permute.xlu0 %1630 }
 0x592   : > { %v2283_v36 = vmul.f32 -1.442695, %v1893_v35  ;;  %v1895_v37 = vpop.f32.mrb[46].mxu1  ;;  %v1648_v52 = vsel %vm777_vm1, %v2306_v56, %v1631_v51  ;;  %v2704_v56 = vld [vmem:[%s3333_s21 + $0x20] sm:$0xff]  }
 0x593   : > { %v1897_v38 = vpop.f32.mrb[47].mxu1 }
 0x594   : > { %2744 = vpow2.f32 %v2283_v36  ;;  %v2284_v39 = vmul.f32 -1.442695, %v1897_v38 }
 0x596   : > { %2746 = vpow2.f32 %v2284_v39 }
 0x59e   : > { %v2745_v40 = vpop.eup %2744 }
 0x59f   : > { %v1906_v41 = vadd.f32 1.0, %v2745_v40 }
 0x5a0   : > { %v2747_v42 = vpop.eup %2746 }
 0x5a1   : > { %2748 = vrcp.f32 %v1906_v41  ;;  %v1907_v44 = vadd.f32 1.0, %v2747_v42 }
 0x5a3   : > { %2750 = vrcp.f32 %v1907_v44 }
 0x5ab   : > { %v2749_v45 = vpop.eup %2748 }
 0x5ac   : > { %v1912_v46 = vmul.f32 %v2749_v45, %v1893_v35 }
 0x5ad   : > { %v2751_v47 = vpop.eup %2750 }
 0x5ae   : > { %v1914_v0 = vmul.f32 %v1912_v46, %v1891_v4  ;;  %v1913_v59 = vmul.f32 %v2751_v47, %v1897_v38 }
 0x5b0   : > { %v1915_v50 = vmul.f32 %v1913_v59, %v1895_v37 }
 0x5b2   : > { %v1916_v26 = vpack.c.bf16 %v1915_v50, %v1914_v0 }
 0x5c6   : > { %v1638_v25 = vpop.permute.xlu1 %1637 }
 0x5c7   : > { %v1651_v54 = vsel %vm1649_vm5, %v1648_v52, %v1638_v25 }
 0x5ce   : > { %v1645_v57 = vpop.permute.xlu0 %1644 }
 0x5cf   : > { %v1654_v58 = vsel %vm1652_vm6, %v1651_v54, %v1645_v57 }
 0x5d0   : > { %2502 = vmatmul.mubr.bf16.vlgmr.msra.gmra.mrb[28].mxu0 %v1654_v58 }
 0x5d1   : > { %2506 = vmatpush3.bf16.msra.mxu0 %v2700_v53  ;;  %2521 = vmatprep.mubr.msk.bf16.mxu0 %vm3005_vm0, %v3004_v5 }
 0x5d2   : > { %2507 = vmatprep.subr.bf16.mxu0 %v3004_v5 }
 0x5d5   : > { %2508 = vmatpush3.bf16.msra.mxu0 %v2701_v60 }
 0x5d6   : > { %2509 = vmatprep.subr.bf16.mxu0 %v3004_v5 }
 0x5d9   : > { %2510 = vmatpush3.bf16.msra.mxu0 %v2702_v43 }
 0x5da   : > { %2511 = vmatprep.subr.bf16.mxu0 %v3004_v5 }
 0x5dd   : > { %2512 = vmatpush3.bf16.msra.mxu0 %v2703_v55 }
 0x5de   : > { %2513 = vmatprep.subr.bf16.mxu0 %v3004_v5 }
 0x5e1   : > { %2514 = vmatpush3.bf16.msra.mxu0 %v2704_v56 }
 0x5e2   : > { %2515 = vmatprep.subr.bf16.mxu0 %v3004_v5 }
 0x5e5   : > { %2516 = vmatpush3.bf16.msra.mxu0 %v2705_v61 }
 0x5e6   : > { %2517 = vmatprep.subr.bf16.mxu0 %v3004_v5 }
 0x5e9   : > { %2518 = vmatpush3.bf16.msra.mxu0 %v2706_v62 }
 0x5ea   : > { %2519 = vmatprep.subr.bf16.mxu0 %v3004_v5 }
 0x5ed   : > { %2520 = vmatpush3.bf16.msra.mxu0 %v2707_v63 }
 0x5f0   : > { %2522 = vmatmul.mubr.bf16.vlgmr.msra.gmra.mrb[28].mxu0 %v1916_v26 }
 0x6c3   : > { %v2015_v48 = vpop.f32.mrb[28].mxu0 }
 0x6c4   : > { %v2525_v1 = vadd.f32 %v2752_v49, %v2015_v48  ;;  %v2523_v2 = vpop.f32.mrb[29].mxu0 }
 0x6c5   : > { %v2018_v6 = vpop.f32.mrb[30].mxu0 }
 0x6c6   : > { %2026 = vst [vmem:[#allocation11] sm:$0xff] %v2525_v1  ;;  %v2526_v7 = vadd.f32 %v2753_v3, %v2018_v6  ;;  %v2524_v8 = vpop.f32.mrb[31].mxu0 }
 0x6c8   : > { %2027 = vst [vmem:[#allocation11 + $0x8] sm:$0xff] %v2526_v7 }
 0x6c9   : > { %2915 = shalt.err (!%p2912_p0)
}
 0x6ca   : > { %s2916_s10 = scalar_lea.hbm %s3668_s6, 256 }
 0x6cb   : > { %p2917_p7 = scmp.ne.s32.totalorder %s3668_s6, %s2916_s10  ;;  %p2922_p4 = scmp.lt.u32.totalorder %s2916_s10, %s3668_s6 }
 0x6cd   : > { %p2918_p1 = pnand %p2917_p7, %p2570_p11 }
 0x6cf   : > { %p2919_p12 = pneg %p2918_p1 }
 0x6d1   : > { %p2924_p8 = pnand %p2922_p4, %p2919_p12 }
 0x6d3   : > { %2927 = shalt.err (!%p2924_p8)
}
 0x6d4   : > { %s3010_s15 = smov 128   ;;  %s3011_s12 = smov 8  }
 0x6d5   : > { %2547 = dma.vmem_to_hbm [thread:$0]  (%p2570_p11), %s2038_s29, 256, %s3668_s6, [#allocation4], %s3010_s15, %s3010_s15, %s3011_s12  }
 0x6d6   : > { %2965 = dma.done.wait (%p2570_p11), [#allocation4], 256  }
 0x6d7   : > { %2967 = vsyncadd (%p2570_p11), [#allocation4], 4294967040 }
 0x6d8 PF: > { %s24_s26 = sadd.s32 1, %s2990_s26   ;;  %s3702_s30 = sld [smem:[#allocation16_spill]] }
 0x6d9   : > { %p21_p5 = scmp.ge.s32.totalorder %s24_s26, 4   ;;  %s3703_s23 = sld [smem:[#allocation18_spill]] }
 0x6da   : > { %s3704_s11 = sld [smem:[#allocation17_spill]]  ;;  %s3705_s21 = smov %s2974_s22 }
 0x6db   : > { %s3707_s24 = smov %s2986_s25  ;;  %23 = sbr.rel (!%p21_p5) target bundleno = 11 (0xb), region = 130 }
 0x6de   : > { %s3706_s22 = smov %s3702_s30 }
 0x6e0   : > { %s3708_s25 = smov %s3704_s11 }
 0x6e2   :  { %2053 = vsyncpa [#allocation3], 1 }
 0x6e3   :  { %2055 = vsyncpa [#allocation3 + $0x1], 1 }
 0x6e4   :  { %2056 = vsyncpa [#allocation6], 1 }
 0x6e5   :  { %2058 = vsyncpa [#allocation6 + $0x1], 1 }
 0x6e6   :  { %2059 = vsyncpa [#allocation9], 1 }
 0x6e7   :  { %2061 = vsyncpa [#allocation9 + $0x1], 1 }
 0x6e8   :  { %2062 = vsyncpa [#allocation4], 1 }
 0x6e9   :  { %2064 = vsyncpa [#allocation4 + $0x1], 1 }

</bundles_post_ra>
